<compile_context>
chip_gen: v7x
topology: tpu7x:2x2x1
jax: 0.10.0
libtpu: 0.0.40
codegen_flags: <defaults>
</compile_context>

<pallas_src>
import functools

import numpy as np

import jax
import jax.numpy as jnp
from jax.experimental import pallas as pl
from jax.experimental.pallas import tpu as pltpu

_VMEM_LIMIT = 48 * 1024 * 1024  # fits v7x's 64 MiB VMEM with headroom

_PARALLEL_PARAMS = pltpu.CompilerParams(
    dimension_semantics=("parallel",), vmem_limit_bytes=_VMEM_LIMIT)
_SERIAL_PARAMS = pltpu.CompilerParams(
    dimension_semantics=("arbitrary",), vmem_limit_bytes=_VMEM_LIMIT)


def _round_up(x, m):
    return ((x + m - 1) // m) * m


# ----------------------------------------------------------------------------
# Generic row-tiled pallas_call wrapper: x:(M,K) tiled over M, side inputs
# (weights / biases) get full-array blocks, output is (M, n_out) f32.
# ----------------------------------------------------------------------------
def _run_rowtiled(kernel, x, side_inputs, n_out, tm_max=256):
    M, K = x.shape
    tm = min(tm_max, _round_up(M, 8))
    Mp = _round_up(M, tm)
    xp = jnp.pad(x, ((0, Mp - M), (0, 0))) if Mp != M else x
    in_specs = [pl.BlockSpec((tm, K), lambda i: (i, 0))]
    for s in side_inputs:
        in_specs.append(pl.BlockSpec(s.shape, lambda i, _nd=s.ndim: (0,) * _nd))
    out = pl.pallas_call(
        kernel,
        grid=(Mp // tm,),
        out_shape=jax.ShapeDtypeStruct((Mp, n_out), jnp.float32),
        in_specs=in_specs,
        out_specs=pl.BlockSpec((tm, n_out), lambda i: (i, 0)),
        compiler_params=_PARALLEL_PARAMS,
    )(xp, *side_inputs)
    return out[:M] if Mp != M else out


# ----------------------------------------------------------------------------
# Kernel 1: o = act(nan_to_zero?(x) @ W + b)          (conv1 / conv2 as matmul)
# ----------------------------------------------------------------------------
def _linear_act_kernel(x_ref, w_ref, b_ref, o_ref, *, act, nan_to_zero):
    x = x_ref[...]
    if nan_to_zero:
        x = jnp.where(jnp.isnan(x), 0.0, x)
    y = jnp.dot(x.astype(jnp.bfloat16), w_ref[...],
                preferred_element_type=jnp.float32) + b_ref[...]
    if act == "relu6":
        y = jnp.clip(y, 0.0, 6.0)
    o_ref[...] = y.astype(o_ref.dtype)


# ----------------------------------------------------------------------------
# Kernel 2: CNN tail fused with the LSTM input projection:
#   o = relu6(relu6(x) @ Wl + bl) @ W_ih       (output is 4H = 128 lanes wide)
# ----------------------------------------------------------------------------
def _cnn_tail_kernel(x_ref, wl_ref, bl_ref, wih_ref, o_ref):
    x = jnp.clip(x_ref[...], 0.0, 6.0)                       # Flatten -> ReLU6
    h = jnp.dot(x.astype(jnp.bfloat16), wl_ref[...],
                preferred_element_type=jnp.float32) + bl_ref[...]
    h = jnp.clip(h, 0.0, 6.0)                                # Linear -> ReLU6
    o_ref[...] = jnp.dot(h.astype(jnp.bfloat16), wih_ref[...],
                         preferred_element_type=jnp.float32).astype(o_ref.dtype)


# ----------------------------------------------------------------------------
# Kernel 3: single-layer LSTM recurrence (no bias), time-major (T, Bp, 4H)
# input is already x @ W_ih; gate order (i, f, g, o) matches torch.nn.LSTM.
# ----------------------------------------------------------------------------
def _lstm_kernel(x_ref, whh_ref, o_ref, h_sc, c_sc):
    T = x_ref.shape[0]
    H = whh_ref.shape[0]
    h_sc[...] = jnp.zeros_like(h_sc)
    c_sc[...] = jnp.zeros_like(c_sc)

    def step(t, carry):
        gates = x_ref[t] + jnp.dot(h_sc[...].astype(jnp.bfloat16), whh_ref[...],
                                   preferred_element_type=jnp.float32)  # (Bp,4H)
        i_g = jax.nn.sigmoid(gates[:, 0:H])
        f_g = jax.nn.sigmoid(gates[:, H:2 * H])
        g_g = jnp.tanh(gates[:, 2 * H:3 * H])
        o_g = jax.nn.sigmoid(gates[:, 3 * H:4 * H])
        c_new = f_g * c_sc[...] + i_g * g_g
        h_new = o_g * jnp.tanh(c_new)
        c_sc[...] = c_new
        h_sc[...] = h_new
        o_ref[t] = h_new
        return carry

    jax.lax.fori_loop(0, T, step, 0, unroll=bool(T <= 16))


def lstm_recurrence(xproj_t, w_hh4):
    """xproj_t:(T,Bp,4H) f32 (already x@W_ih), w_hh4:(H,4H) bf16 -> (T,Bp,H)."""
    T, Bp, G = xproj_t.shape
    H = w_hh4.shape[0]
    return pl.pallas_call(
        _lstm_kernel,
        grid=(1,),
        out_shape=jax.ShapeDtypeStruct((T, Bp, H), jnp.float32),
        in_specs=[pl.BlockSpec((T, Bp, G), lambda i: (0, 0, 0)),
                  pl.BlockSpec((H, G), lambda i: (0, 0))],
        out_specs=pl.BlockSpec((T, Bp, H), lambda i: (0, 0, 0)),
        scratch_shapes=[pltpu.VMEM((Bp, H), jnp.float32),    # h state
                        pltpu.VMEM((Bp, H), jnp.float32)],   # c state
        compiler_params=_SERIAL_PARAMS,
    )(xproj_t, w_hh4)


# ----------------------------------------------------------------------------
# Kernel 4: fused DSM heads.  x -> ReLU6 -> x@[Wshape|Wscale|Wgate] + b, then
#   cols [0,2k): SELU(.) + (shape,scale) params;  cols [2k,3k): logits / temp.
# ----------------------------------------------------------------------------
def _heads_kernel(x_ref, w_ref, b_ref, c_ref, o_ref, *, k, inv_temp):
    x = jnp.clip(x_ref[...], 0.0, 6.0)                       # ReLU6 on xrep
    y = jnp.dot(x.astype(jnp.bfloat16), w_ref[...],
                preferred_element_type=jnp.float32) + b_ref[...]
    lam = 1.0507009873554805
    alpha = 1.6732632423543772
    selu = lam * jnp.where(y > 0, y, alpha * (jnp.exp(jnp.minimum(y, 0.0)) - 1.0))
    col = jax.lax.broadcasted_iota(jnp.int32, y.shape, 1)
    o_ref[...] = jnp.where(col < 2 * k, selu + c_ref[...],
                           y * inv_temp).astype(o_ref.dtype)


# ----------------------------------------------------------------------------
# JAX glue: 2x2 max-pool and dense-conv-matrix construction (init time).
# ----------------------------------------------------------------------------
def maxpool2x2(x):
    """torch MaxPool2d(2,2) semantics on NHWC (floor, drop trailing row/col)."""
    n, h, w, c = x.shape
    oh, ow = h // 2, w // 2
    x = x[:, :oh * 2, :ow * 2, :]
    return jnp.max(x.reshape(n, oh, 2, ow, 2, c), axis=(2, 4))


def conv3x3_to_dense(w, ih, iw):
    """Fold a 3x3 'valid' conv into a dense matmul matrix (host-side, init).

    w: (3,3,cin,cout)  ->  K: (ih*iw*cin, oh*ow*cout), NHWC-flat rows and cols.
    Only sensible because this module's images are tiny (<= 16x16)."""
    _, _, cin, cout = w.shape
    oh, ow = ih - 2, iw - 2
    K = np.zeros((ih * iw * cin, oh * ow * cout), np.float32)
    for oy in range(oh):
        for ox in range(ow):
            for ky in range(3):
                for kx in range(3):
                    iy, ix = oy + ky, ox + kx
                    r = (iy * iw + ix) * cin
                    c = (oy * ow + ox) * cout
                    K[r:r + cin, c:c + cout] = w[ky, kx]
    return K


# ----------------------------------------------------------------------------
# Forward pass (mirrors DeepCNNRNNDPTorch.forward, dist='Weibull', typ='LSTM')
# ----------------------------------------------------------------------------
@functools.partial(jax.jit, static_argnames=("hidden", "temp", "k"))
def forward_dense(x, params, *, hidden, temp, k):
    """Everything except the data-dependent row filter (jittable)."""
    B, T, Hh, Ww = x.shape
    N = B * T
    inputmask = ~jnp.isnan(x[:, :, 0, 0]).reshape(-1)        # (B*T,)

    # --- CNN: conv1 (+NaN->0 +bias +ReLU6) as one lane-dense matmul ---------
    x_flat = x.reshape(N, Hh * Ww)
    y1 = _run_rowtiled(
        functools.partial(_linear_act_kernel, act="relu6", nan_to_zero=True),
        x_flat, [params["K1"], params["b1t"]], params["K1"].shape[1])
    oh1, ow1 = Hh - 2, Ww - 2
    p1 = maxpool2x2(y1.reshape(N, oh1, ow1, 6))              # XLA glue (small)

    # --- conv2 (+bias +ReLU6) ------------------------------------------------
    ph1, pw1 = p1.shape[1], p1.shape[2]
    y2 = _run_rowtiled(
        functools.partial(_linear_act_kernel, act="relu6", nan_to_zero=False),
        p1.reshape(N, ph1 * pw1 * 6), [params["K2"], params["b2t"]],
        params["K2"].shape[1])
    oh2, ow2 = ph1 - 2, pw1 - 2
    p2 = maxpool2x2(y2.reshape(N, oh2, ow2, 16))

    # --- flatten (NHWC order; permutation folded into wl) -> ReLU6 ->
    #     Linear(.,hidden)+ReLU6 -> LSTM input projection, all fused ----------
    flat = p2.reshape(N, -1)
    xproj = _run_rowtiled(_cnn_tail_kernel, flat,
                          [params["wl"], params["bl2"], params["w_ih4"]],
                          4 * hidden)                        # (B*T, 4H)

    # --- LSTM recurrence (time-major, batch padded to sublane multiple) ------
    Bp = _round_up(B, 8)
    xproj_t = jnp.transpose(xproj.reshape(B, T, 4 * hidden), (1, 0, 2))
    if Bp != B:
        xproj_t = jnp.pad(xproj_t, ((0, 0), (0, Bp - B), (0, 0)))
    h_seq = lstm_recurrence(xproj_t, params["w_hh4"])        # (T, Bp, H)
    xrep = jnp.transpose(h_seq[:, :B, :], (1, 0, 2)).reshape(N, hidden)

    # --- fused heads: ReLU6 -> [SELU(xW+b)+shape | SELU(xW+b)+scale | xW/temp]
    # TODO(synk): `self.gate` is never defined in the provided torch source;
    # implemented as the DSM gate Linear(hidden, k, bias=False), logits / temp.
    heads = _run_rowtiled(
        functools.partial(_heads_kernel, k=k, inv_temp=1.0 / temp),
        xrep, [params["wheads"], params["bheads"], params["cheads"]], 3 * k)
    return heads, inputmask


def forward(x, params, hidden, temp, k):
    heads, inputmask = forward_dense(x, params, hidden=hidden, temp=temp, k=k)
    # TODO(synk): data-dependent boolean row filter (dynamic output shape)
    # matches the torch semantics but must run eagerly outside jit.
    heads = heads[inputmask]
    return heads[:, :k], heads[:, k:2 * k], heads[:, 2 * k:]


# ----------------------------------------------------------------------------
# Parameter construction (random init; comments note the permutations needed
# if importing a torch checkpoint).
# ----------------------------------------------------------------------------
def init_params(key, inputdim, hidden, k):
    H, W = inputdim
    oh1, ow1 = H - 2, W - 2
    ph1, pw1 = oh1 // 2, ow1 // 2
    oh2, ow2 = ph1 - 2, pw1 - 2
    ph2, pw2 = oh2 // 2, ow2 // 2
    flatdim = 16 * ph2 * pw2
    keys = jax.random.split(key, 13)
    bf16 = jnp.bfloat16

    def tn(k_, shape, s=0.1):
        return (s * jax.random.normal(k_, shape)).astype(jnp.float32)

    # Conv weights in (kh, kw, cin, cout) layout (permute torch's
    # (cout, cin, kh, kw) when importing).  Folded into dense matmul matrices.
    w1 = tn(keys[0], (3, 3, 1, 6)); b1 = tn(keys[1], (6,))
    w2 = tn(keys[2], (3, 3, 6, 16)); b2 = tn(keys[3], (16,))
    K1 = conv3x3_to_dense(np.asarray(w1), H, W)              # (H*W, oh1*ow1*6)
    K2 = conv3x3_to_dense(np.asarray(w2), ph1, pw1)          # (294, oh2*ow2*16)
    b1t = jnp.tile(b1, oh1 * ow1).reshape(1, -1)
    b2t = jnp.tile(b2, oh2 * ow2).reshape(1, -1)

    # Linear(flatdim, hidden): rows stored in NHWC-flatten order (fold torch's
    # NCHW-flatten permutation into the weight when importing a checkpoint).
    wl = tn(keys[4], (flatdim, hidden)); bl = tn(keys[5], (hidden,))

    # LSTM (no bias): weights pre-transposed to (H, 4H), gate cols [i|f|g|o].
    w_ih4 = tn(keys[6], (hidden, 4 * hidden))
    w_hh4 = tn(keys[7], (hidden, 4 * hidden))

    # DSM heads, concatenated to (hidden, 3k): [shapeg | scaleg | gate].
    w_shapeg = tn(keys[8], (hidden, k)); b_shapeg = tn(keys[9], (k,))
    w_scaleg = tn(keys[10], (hidden, k)); b_scaleg = tn(keys[11], (k,))
    w_gate = tn(keys[12], (hidden, k))
    wheads = jnp.concatenate([w_shapeg, w_scaleg, w_gate], axis=1)
    bheads = jnp.concatenate(
        [b_shapeg, b_scaleg, jnp.zeros((k,), jnp.float32)]).reshape(1, -1)
    cheads = jnp.concatenate(                                # Weibull init: -1
        [-jnp.ones((2 * k,), jnp.float32),
         jnp.zeros((k,), jnp.float32)]).reshape(1, -1)

    return dict(
        K1=jnp.asarray(K1, bf16), b1t=b1t,
        K2=jnp.asarray(K2, bf16), b2t=b2t,
        wl=wl.astype(bf16), bl2=bl.reshape(1, -1),
        w_ih4=w_ih4.astype(bf16), w_hh4=w_hh4.astype(bf16),
        wheads=wheads.astype(bf16), bheads=bheads, cheads=cheads,
    )


if __name__ == "__main__":
    B, T = 2, 4
    inputdim = (16, 16)
    hidden, k = 32, 4
    temp = 1000.0

    key = jax.random.PRNGKey(0)
    kx, kp = jax.random.split(key)
    x = jax.random.normal(kx, (B, T) + inputdim, dtype=jnp.float32)
    x = x.at[1, 3].set(jnp.nan)            # one missing (padded) frame
    params = init_params(kp, inputdim, hidden, k)

    shp, scl, gate = forward(x, params, hidden, temp, k)
    jax.block_until_ready((shp, scl, gate))

    n_valid = B * T - 1                    # one frame masked out
    assert shp.shape == (n_valid, k), shp.shape
    assert scl.shape == (n_valid, k), scl.shape
    assert gate.shape == (n_valid, k), gate.shape
    assert bool(jnp.all(jnp.isfinite(shp)) & jnp.all(jnp.isfinite(scl))
                & jnp.all(jnp.isfinite(gate)))
    print("KERNEL_OK")
</pallas_src>

<mosaic_0001>
module attributes {stable_mosaic.version = 11 : i64} {
  func.func @_linear_act_kernel(%arg0: i32, %arg1: memref<8x256xf32, #tpu.memory_space<vmem>>, %arg2: memref<256x1176xbf16, #tpu.memory_space<vmem>>, %arg3: memref<1x1176xf32, #tpu.memory_space<vmem>>, %arg4: memref<8x1176xf32, #tpu.memory_space<vmem>>) attributes {dimension_semantics = [#tpu.dimension_semantics<parallel>], iteration_bounds = array<i64: 1>, scalar_prefetch = 0 : i64, scratch_operands = 0 : i64, tpu.core_type = #tpu.core_type<tc>, window_params = [{transform_indices = @transform_0, window_bounds = array<i64: 8, 256>}, {pipeline_mode = #tpu.pipeline_mode<synchronous>, transform_indices = @transform_1, window_bounds = array<i64: 256, 1176>}, {pipeline_mode = #tpu.pipeline_mode<synchronous>, transform_indices = @transform_2, window_bounds = array<i64: 1, 1176>}, {transform_indices = @transform_3, window_bounds = array<i64: 8, 1176>}]} {
    %c0 = arith.constant 0 : index
    %c0_0 = arith.constant 0 : index
    %0 = vector.load %arg1[%c0, %c0_0] : memref<8x256xf32, #tpu.memory_space<vmem>>, vector<8x256xf32>
    %1 = arith.cmpf one, %0, %0 : vector<8x256xf32>
    %cst = arith.constant 0.000000e+00 : f32
    %2 = vector.broadcast %cst : f32 to vector<8x256xf32>
    %3 = arith.select %1, %2, %0 : vector<8x256xi1>, vector<8x256xf32>
    %4 = arith.truncf %3 : vector<8x256xf32> to vector<8x256xbf16>
    %c0_1 = arith.constant 0 : index
    %c0_2 = arith.constant 0 : index
    %5 = vector.load %arg2[%c0_1, %c0_2] : memref<256x1176xbf16, #tpu.memory_space<vmem>>, vector<256x1176xbf16>
    %cst_3 = arith.constant dense<0.000000e+00> : vector<8x1176xf32>
    %6 = tpu.matmul %4, %5, %cst_3 {dimension_numbers = #tpu.dot_dimension_numbers<[1], [0], [0], [1], [0, 0, 1, 1], [], []>} : vector<8x256xbf16>, vector<256x1176xbf16>, vector<8x1176xf32> -> vector<8x1176xf32>
    %c0_4 = arith.constant 0 : index
    %c0_5 = arith.constant 0 : index
    %7 = vector.load %arg3[%c0_4, %c0_5] : memref<1x1176xf32, #tpu.memory_space<vmem>>, vector<1x1176xf32>
    %8 = vector.broadcast %7 : vector<1x1176xf32> to vector<8x1176xf32>
    %9 = arith.addf %6, %8 : vector<8x1176xf32>
    %cst_6 = arith.constant 0.000000e+00 : f32
    %cst_7 = arith.constant 6.000000e+00 : f32
    %10 = vector.broadcast %cst_6 : f32 to vector<8x1176xf32>
    %11 = arith.maximumf %10, %9 : vector<8x1176xf32>
    %12 = vector.broadcast %cst_7 : f32 to vector<8x1176xf32>
    %13 = arith.minimumf %12, %11 : vector<8x1176xf32>
    %c0_8 = arith.constant 0 : index
    %c0_9 = arith.constant 0 : index
    %14 = vector.load %arg4[%c0_8, %c0_9] : memref<8x1176xf32, #tpu.memory_space<vmem>>, vector<8x1176xf32>
    tpu.vector_store %arg4[%c0_8, %c0_9], %13 {strides = array<i32>} : memref<8x1176xf32, #tpu.memory_space<vmem>>, vector<8x1176xf32>,
    return
  }
  func.func @transform_0(%arg0: i32) -> (i32, i32) {
    %c0_i32 = arith.constant 0 : i32
    %c0_i32_0 = arith.constant 0 : i32
    return %arg0, %c0_i32 : i32, i32
  }
  func.func @transform_1(%arg0: i32) -> (i32, i32) {
    %c0_i32 = arith.constant 0 : i32
    %c0_i32_0 = arith.constant 0 : i32
    %c0_i32_1 = arith.constant 0 : i32
    return %c0_i32, %c0_i32_0 : i32, i32
  }
  func.func @transform_2(%arg0: i32) -> (i32, i32) {
    %c0_i32 = arith.constant 0 : i32
    %c0_i32_0 = arith.constant 0 : i32
    %c0_i32_1 = arith.constant 0 : i32
    return %c0_i32, %c0_i32_0 : i32, i32
  }
  func.func @transform_3(%arg0: i32) -> (i32, i32) {
    %c0_i32 = arith.constant 0 : i32
    %c0_i32_0 = arith.constant 0 : i32
    return %arg0, %c0_i32 : i32, i32
  }
}

module attributes {stable_mosaic.version = 11 : i64} {
  func.func @_linear_act_kernel(%arg0: i32, %arg1: memref<8x294xf32, #tpu.memory_space<vmem>>, %arg2: memref<294x400xbf16, #tpu.memory_space<vmem>>, %arg3: memref<1x400xf32, #tpu.memory_space<vmem>>, %arg4: memref<8x400xf32, #tpu.memory_space<vmem>>) attributes {dimension_semantics = [#tpu.dimension_semantics<parallel>], iteration_bounds = array<i64: 1>, scalar_prefetch = 0 : i64, scratch_operands = 0 : i64, tpu.core_type = #tpu.core_type<tc>, window_params = [{transform_indices = @transform_0, window_bounds = array<i64: 8, 294>}, {pipeline_mode = #tpu.pipeline_mode<synchronous>, transform_indices = @transform_1, window_bounds = array<i64: 294, 400>}, {pipeline_mode = #tpu.pipeline_mode<synchronous>, transform_indices = @transform_2, window_bounds = array<i64: 1, 400>}, {transform_indices = @transform_3, window_bounds = array<i64: 8, 400>}]} {
    %c0 = arith.constant 0 : index
    %c0_0 = arith.constant 0 : index
    %0 = vector.load %arg1[%c0, %c0_0] : memref<8x294xf32, #tpu.memory_space<vmem>>, vector<8x294xf32>
    %1 = arith.truncf %0 : vector<8x294xf32> to vector<8x294xbf16>
    %c0_1 = arith.constant 0 : index
    %c0_2 = arith.constant 0 : index
    %2 = vector.load %arg2[%c0_1, %c0_2] : memref<294x400xbf16, #tpu.memory_space<vmem>>, vector<294x400xbf16>
    %cst = arith.constant dense<0.000000e+00> : vector<8x400xf32>
    %3 = tpu.matmul %1, %2, %cst {dimension_numbers = #tpu.dot_dimension_numbers<[1], [0], [0], [1], [0, 0, 1, 1], [], []>} : vector<8x294xbf16>, vector<294x400xbf16>, vector<8x400xf32> -> vector<8x400xf32>
    %c0_3 = arith.constant 0 : index
    %c0_4 = arith.constant 0 : index
    %4 = vector.load %arg3[%c0_3, %c0_4] : memref<1x400xf32, #tpu.memory_space<vmem>>, vector<1x400xf32>
    %5 = vector.broadcast %4 : vector<1x400xf32> to vector<8x400xf32>
    %6 = arith.addf %3, %5 : vector<8x400xf32>
    %cst_5 = arith.constant 0.000000e+00 : f32
    %cst_6 = arith.constant 6.000000e+00 : f32
    %7 = vector.broadcast %cst_5 : f32 to vector<8x400xf32>
    %8 = arith.maximumf %7, %6 : vector<8x400xf32>
    %9 = vector.broadcast %cst_6 : f32 to vector<8x400xf32>
    %10 = arith.minimumf %9, %8 : vector<8x400xf32>
    %c0_7 = arith.constant 0 : index
    %c0_8 = arith.constant 0 : index
    %11 = vector.load %arg4[%c0_7, %c0_8] : memref<8x400xf32, #tpu.memory_space<vmem>>, vector<8x400xf32>
    tpu.vector_store %arg4[%c0_7, %c0_8], %10 {strides = array<i32>} : memref<8x400xf32, #tpu.memory_space<vmem>>, vector<8x400xf32>,
    return
  }
  func.func @transform_0(%arg0: i32) -> (i32, i32) {
    %c0_i32 = arith.constant 0 : i32
    %c0_i32_0 = arith.constant 0 : i32
    return %arg0, %c0_i32 : i32, i32
  }
  func.func @transform_1(%arg0: i32) -> (i32, i32) {
    %c0_i32 = arith.constant 0 : i32
    %c0_i32_0 = arith.constant 0 : i32
    %c0_i32_1 = arith.constant 0 : i32
    return %c0_i32, %c0_i32_0 : i32, i32
  }
  func.func @transform_2(%arg0: i32) -> (i32, i32) {
    %c0_i32 = arith.constant 0 : i32
    %c0_i32_0 = arith.constant 0 : i32
    %c0_i32_1 = arith.constant 0 : i32
    return %c0_i32, %c0_i32_0 : i32, i32
  }
  func.func @transform_3(%arg0: i32) -> (i32, i32) {
    %c0_i32 = arith.constant 0 : i32
    %c0_i32_0 = arith.constant 0 : i32
    return %arg0, %c0_i32 : i32, i32
  }
}

module attributes {stable_mosaic.version = 11 : i64} {
  func.func @_cnn_tail_kernel(%arg0: i32, %arg1: memref<8x64xf32, #tpu.memory_space<vmem>>, %arg2: memref<64x32xbf16, #tpu.memory_space<vmem>>, %arg3: memref<1x32xf32, #tpu.memory_space<vmem>>, %arg4: memref<32x128xbf16, #tpu.memory_space<vmem>>, %arg5: memref<8x128xf32, #tpu.memory_space<vmem>>) attributes {dimension_semantics = [#tpu.dimension_semantics<parallel>], iteration_bounds = array<i64: 1>, scalar_prefetch = 0 : i64, scratch_operands = 0 : i64, tpu.core_type = #tpu.core_type<tc>, window_params = [{transform_indices = @transform_0, window_bounds = array<i64: 8, 64>}, {pipeline_mode = #tpu.pipeline_mode<synchronous>, transform_indices = @transform_1, window_bounds = array<i64: 64, 32>}, {pipeline_mode = #tpu.pipeline_mode<synchronous>, transform_indices = @transform_2, window_bounds = array<i64: 1, 32>}, {pipeline_mode = #tpu.pipeline_mode<synchronous>, transform_indices = @transform_3, window_bounds = array<i64: 32, 128>}, {transform_indices = @transform_4, window_bounds = array<i64: 8, 128>}]} {
    %c0 = arith.constant 0 : index
    %c0_0 = arith.constant 0 : index
    %0 = vector.load %arg1[%c0, %c0_0] : memref<8x64xf32, #tpu.memory_space<vmem>>, vector<8x64xf32>
    %cst = arith.constant 0.000000e+00 : f32
    %cst_1 = arith.constant 6.000000e+00 : f32
    %1 = vector.broadcast %cst : f32 to vector<8x64xf32>
    %2 = arith.maximumf %1, %0 : vector<8x64xf32>
    %3 = vector.broadcast %cst_1 : f32 to vector<8x64xf32>
    %4 = arith.minimumf %3, %2 : vector<8x64xf32>
    %5 = arith.truncf %4 : vector<8x64xf32> to vector<8x64xbf16>
    %c0_2 = arith.constant 0 : index
    %c0_3 = arith.constant 0 : index
    %6 = vector.load %arg2[%c0_2, %c0_3] : memref<64x32xbf16, #tpu.memory_space<vmem>>, vector<64x32xbf16>
    %cst_4 = arith.constant dense<0.000000e+00> : vector<8x32xf32>
    %7 = tpu.matmul %5, %6, %cst_4 {dimension_numbers = #tpu.dot_dimension_numbers<[1], [0], [0], [1], [0, 0, 1, 1], [], []>} : vector<8x64xbf16>, vector<64x32xbf16>, vector<8x32xf32> -> vector<8x32xf32>
    %c0_5 = arith.constant 0 : index
    %c0_6 = arith.constant 0 : index
    %8 = vector.load %arg3[%c0_5, %c0_6] : memref<1x32xf32, #tpu.memory_space<vmem>>, vector<1x32xf32>
    %9 = vector.broadcast %8 : vector<1x32xf32> to vector<8x32xf32>
    %10 = arith.addf %7, %9 : vector<8x32xf32>
    %cst_7 = arith.constant 0.000000e+00 : f32
    %cst_8 = arith.constant 6.000000e+00 : f32
    %11 = vector.broadcast %cst_7 : f32 to vector<8x32xf32>
    %12 = arith.maximumf %11, %10 : vector<8x32xf32>
    %13 = vector.broadcast %cst_8 : f32 to vector<8x32xf32>
    %14 = arith.minimumf %13, %12 : vector<8x32xf32>
    %15 = arith.truncf %14 : vector<8x32xf32> to vector<8x32xbf16>
    %c0_9 = arith.constant 0 : index
    %c0_10 = arith.constant 0 : index
    %16 = vector.load %arg4[%c0_9, %c0_10] : memref<32x128xbf16, #tpu.memory_space<vmem>>, vector<32x128xbf16>
    %cst_11 = arith.constant dense<0.000000e+00> : vector<8x128xf32>
    %17 = tpu.matmul %15, %16, %cst_11 {dimension_numbers = #tpu.dot_dimension_numbers<[1], [0], [0], [1], [0, 0, 1, 1], [], []>} : vector<8x32xbf16>, vector<32x128xbf16>, vector<8x128xf32> -> vector<8x128xf32>
    %c0_12 = arith.constant 0 : index
    %c0_13 = arith.constant 0 : index
    %18 = vector.load %arg5[%c0_12, %c0_13] : memref<8x128xf32, #tpu.memory_space<vmem>>, vector<8x128xf32>
    tpu.vector_store %arg5[%c0_12, %c0_13], %17 {strides = array<i32>} : memref<8x128xf32, #tpu.memory_space<vmem>>, vector<8x128xf32>,
    return
  }
  func.func @transform_0(%arg0: i32) -> (i32, i32) {
    %c0_i32 = arith.constant 0 : i32
    %c0_i32_0 = arith.constant 0 : i32
    return %arg0, %c0_i32 : i32, i32
  }
  func.func @transform_1(%arg0: i32) -> (i32, i32) {
    %c0_i32 = arith.constant 0 : i32
    %c0_i32_0 = arith.constant 0 : i32
    %c0_i32_1 = arith.constant 0 : i32
    return %c0_i32, %c0_i32_0 : i32, i32
  }
  func.func @transform_2(%arg0: i32) -> (i32, i32) {
    %c0_i32 = arith.constant 0 : i32
    %c0_i32_0 = arith.constant 0 : i32
    %c0_i32_1 = arith.constant 0 : i32
    return %c0_i32, %c0_i32_0 : i32, i32
  }
  func.func @transform_3(%arg0: i32) -> (i32, i32) {
    %c0_i32 = arith.constant 0 : i32
    %c0_i32_0 = arith.constant 0 : i32
    %c0_i32_1 = arith.constant 0 : i32
    return %c0_i32, %c0_i32_0 : i32, i32
  }
  func.func @transform_4(%arg0: i32) -> (i32, i32) {
    %c0_i32 = arith.constant 0 : i32
    %c0_i32_0 = arith.constant 0 : i32
    return %arg0, %c0_i32 : i32, i32
  }
}

module attributes {stable_mosaic.version = 11 : i64} {
  func.func @_lstm_kernel(%arg0: i32, %arg1: memref<4x8x128xf32, #tpu.memory_space<vmem>>, %arg2: memref<32x128xbf16, #tpu.memory_space<vmem>>, %arg3: memref<4x8x32xf32, #tpu.memory_space<vmem>>, %arg4: memref<8x32xf32, #tpu.memory_space<vmem>>, %arg5: memref<8x32xf32, #tpu.memory_space<vmem>>) attributes {dimension_semantics = [#tpu.dimension_semantics<arbitrary>], iteration_bounds = array<i64: 1>, scalar_prefetch = 0 : i64, scratch_operands = 2 : i64, tpu.core_type = #tpu.core_type<tc>, window_params = [{pipeline_mode = #tpu.pipeline_mode<synchronous>, transform_indices = @transform_0, window_bounds = array<i64: 4, 8, 128>}, {pipeline_mode = #tpu.pipeline_mode<synchronous>, transform_indices = @transform_1, window_bounds = array<i64: 32, 128>}, {pipeline_mode = #tpu.pipeline_mode<synchronous>, transform_indices = @transform_2, window_bounds = array<i64: 4, 8, 32>}]} {
    %cst = arith.constant 0.000000e+00 : f32
    %0 = vector.broadcast %cst : f32 to vector<8x32xf32>
    %c0 = arith.constant 0 : index
    %c0_0 = arith.constant 0 : index
    %1 = vector.load %arg4[%c0, %c0_0] : memref<8x32xf32, #tpu.memory_space<vmem>>, vector<8x32xf32>
    tpu.vector_store %arg4[%c0, %c0_0], %0 {strides = array<i32>} : memref<8x32xf32, #tpu.memory_space<vmem>>, vector<8x32xf32>,
    %cst_1 = arith.constant 0.000000e+00 : f32
    %2 = vector.broadcast %cst_1 : f32 to vector<8x32xf32>
    %c0_2 = arith.constant 0 : index
    %c0_3 = arith.constant 0 : index
    %3 = vector.load %arg5[%c0_2, %c0_3] : memref<8x32xf32, #tpu.memory_space<vmem>>, vector<8x32xf32>
    tpu.vector_store %arg5[%c0_2, %c0_3], %2 {strides = array<i32>} : memref<8x32xf32, #tpu.memory_space<vmem>>, vector<8x32xf32>,
    %c0_i32 = arith.constant 0 : i32
    %4 = arith.index_cast %c0_i32 : i32 to index
    %c0_4 = arith.constant 0 : index
    %c0_5 = arith.constant 0 : index
    %5 = vector.load %arg1[%4, %c0_4, %c0_5] : memref<4x8x128xf32, #tpu.memory_space<vmem>>, vector<1x8x128xf32>
    %6 = vector.shape_cast %5 : vector<1x8x128xf32> to vector<8x128xf32>
    %c0_6 = arith.constant 0 : index
    %c0_7 = arith.constant 0 : index
    %7 = vector.load %arg4[%c0_6, %c0_7] : memref<8x32xf32, #tpu.memory_space<vmem>>, vector<8x32xf32>
    %8 = arith.truncf %7 : vector<8x32xf32> to vector<8x32xbf16>
    %c0_8 = arith.constant 0 : index
    %c0_9 = arith.constant 0 : index
    %9 = vector.load %arg2[%c0_8, %c0_9] : memref<32x128xbf16, #tpu.memory_space<vmem>>, vector<32x128xbf16>
    %cst_10 = arith.constant dense<0.000000e+00> : vector<8x128xf32>
    %10 = tpu.matmul %8, %9, %cst_10 {dimension_numbers = #tpu.dot_dimension_numbers<[1], [0], [0], [1], [0, 0, 1, 1], [], []>} : vector<8x32xbf16>, vector<32x128xbf16>, vector<8x128xf32> -> vector<8x128xf32>
    %11 = arith.addf %6, %10 : vector<8x128xf32>
    %12 = vector.extract_strided_slice %11 {offsets = [0, 0], sizes = [8, 32], strides = [1, 1]} : vector<8x128xf32> to vector<8x32xf32>
    %13 = arith.negf %12 : vector<8x32xf32>
    %14 = math.exp %13 : vector<8x32xf32>
    %cst_11 = arith.constant 1.000000e+00 : f32
    %15 = vector.broadcast %cst_11 : f32 to vector<8x32xf32>
    %16 = arith.addf %15, %14 : vector<8x32xf32>
    %17 = arith.divf %15, %16 : vector<8x32xf32>
    %18 = vector.extract_strided_slice %11 {offsets = [0, 32], sizes = [8, 32], strides = [1, 1]} : vector<8x128xf32> to vector<8x32xf32>
    %19 = arith.negf %18 : vector<8x32xf32>
    %20 = math.exp %19 : vector<8x32xf32>
    %cst_12 = arith.constant 1.000000e+00 : f32
    %21 = vector.broadcast %cst_12 : f32 to vector<8x32xf32>
    %22 = arith.addf %21, %20 : vector<8x32xf32>
    %23 = arith.divf %21, %22 : vector<8x32xf32>
    %24 = vector.extract_strided_slice %11 {offsets = [0, 64], sizes = [8, 32], strides = [1, 1]} : vector<8x128xf32> to vector<8x32xf32>
    %25 = math.tanh %24 : vector<8x32xf32>
    %26 = vector.extract_strided_slice %11 {offsets = [0, 96], sizes = [8, 32], strides = [1, 1]} : vector<8x128xf32> to vector<8x32xf32>
    %27 = arith.negf %26 : vector<8x32xf32>
    %28 = math.exp %27 : vector<8x32xf32>
    %cst_13 = arith.constant 1.000000e+00 : f32
    %29 = vector.broadcast %cst_13 : f32 to vector<8x32xf32>
    %30 = arith.addf %29, %28 : vector<8x32xf32>
    %31 = arith.divf %29, %30 : vector<8x32xf32>
    %c0_14 = arith.constant 0 : index
    %c0_15 = arith.constant 0 : index
    %32 = vector.load %arg5[%c0_14, %c0_15] : memref<8x32xf32, #tpu.memory_space<vmem>>, vector<8x32xf32>
    %33 = arith.mulf %23, %32 : vector<8x32xf32>
    %34 = arith.mulf %17, %25 : vector<8x32xf32>
    %35 = arith.addf %33, %34 : vector<8x32xf32>
    %36 = math.tanh %35 : vector<8x32xf32>
    %37 = arith.mulf %31, %36 : vector<8x32xf32>
    %c0_16 = arith.constant 0 : index
    %c0_17 = arith.constant 0 : index
    %38 = vector.load %arg5[%c0_16, %c0_17] : memref<8x32xf32, #tpu.memory_space<vmem>>, vector<8x32xf32>
    tpu.vector_store %arg5[%c0_16, %c0_17], %35 {strides = array<i32>} : memref<8x32xf32, #tpu.memory_space<vmem>>, vector<8x32xf32>,
    %c0_18 = arith.constant 0 : index
    %c0_19 = arith.constant 0 : index
    %39 = vector.load %arg4[%c0_18, %c0_19] : memref<8x32xf32, #tpu.memory_space<vmem>>, vector<8x32xf32>
    tpu.vector_store %arg4[%c0_18, %c0_19], %37 {strides = array<i32>} : memref<8x32xf32, #tpu.memory_space<vmem>>, vector<8x32xf32>,
    %40 = arith.index_cast %c0_i32 : i32 to index
    %c0_20 = arith.constant 0 : index
    %c0_21 = arith.constant 0 : index
    %41 = vector.load %arg3[%40, %c0_20, %c0_21] : memref<4x8x32xf32, #tpu.memory_space<vmem>>, vector<1x8x32xf32>
    %42 = vector.shape_cast %41 : vector<1x8x32xf32> to vector<8x32xf32>
    %43 = vector.shape_cast %37 : vector<8x32xf32> to vector<1x8x32xf32>
    tpu.vector_store %arg3[%40, %c0_20, %c0_21], %43 {strides = array<i32>} : memref<4x8x32xf32, #tpu.memory_space<vmem>>, vector<1x8x32xf32>,
    %c1_i32 = arith.constant 1 : i32
    %44 = arith.index_cast %c1_i32 : i32 to index
    %c0_22 = arith.constant 0 : index
    %c0_23 = arith.constant 0 : index
    %45 = vector.load %arg1[%44, %c0_22, %c0_23] : memref<4x8x128xf32, #tpu.memory_space<vmem>>, vector<1x8x128xf32>
    %46 = vector.shape_cast %45 : vector<1x8x128xf32> to vector<8x128xf32>
    %c0_24 = arith.constant 0 : index
    %c0_25 = arith.constant 0 : index
    %47 = vector.load %arg4[%c0_24, %c0_25] : memref<8x32xf32, #tpu.memory_space<vmem>>, vector<8x32xf32>
    %48 = arith.truncf %47 : vector<8x32xf32> to vector<8x32xbf16>
    %c0_26 = arith.constant 0 : index
    %c0_27 = arith.constant 0 : index
    %49 = vector.load %arg2[%c0_26, %c0_27] : memref<32x128xbf16, #tpu.memory_space<vmem>>, vector<32x128xbf16>
    %cst_28 = arith.constant dense<0.000000e+00> : vector<8x128xf32>
    %50 = tpu.matmul %48, %49, %cst_28 {dimension_numbers = #tpu.dot_dimension_numbers<[1], [0], [0], [1], [0, 0, 1, 1], [], []>} : vector<8x32xbf16>, vector<32x128xbf16>, vector<8x128xf32> -> vector<8x128xf32>
    %51 = arith.addf %46, %50 : vector<8x128xf32>
    %52 = vector.extract_strided_slice %51 {offsets = [0, 0], sizes = [8, 32], strides = [1, 1]} : vector<8x128xf32> to vector<8x32xf32>
    %53 = arith.negf %52 : vector<8x32xf32>
    %54 = math.exp %53 : vector<8x32xf32>
    %cst_29 = arith.constant 1.000000e+00 : f32
    %55 = vector.broadcast %cst_29 : f32 to vector<8x32xf32>
    %56 = arith.addf %55, %54 : vector<8x32xf32>
    %57 = arith.divf %55, %56 : vector<8x32xf32>
    %58 = vector.extract_strided_slice %51 {offsets = [0, 32], sizes = [8, 32], strides = [1, 1]} : vector<8x128xf32> to vector<8x32xf32>
    %59 = arith.negf %58 : vector<8x32xf32>
    %60 = math.exp %59 : vector<8x32xf32>
    %cst_30 = arith.constant 1.000000e+00 : f32
    %61 = vector.broadcast %cst_30 : f32 to vector<8x32xf32>
    %62 = arith.addf %61, %60 : vector<8x32xf32>
    %63 = arith.divf %61, %62 : vector<8x32xf32>
    %64 = vector.extract_strided_slice %51 {offsets = [0, 64], sizes = [8, 32], strides = [1, 1]} : vector<8x128xf32> to vector<8x32xf32>
    %65 = math.tanh %64 : vector<8x32xf32>
    %66 = vector.extract_strided_slice %51 {offsets = [0, 96], sizes = [8, 32], strides = [1, 1]} : vector<8x128xf32> to vector<8x32xf32>
    %67 = arith.negf %66 : vector<8x32xf32>
    %68 = math.exp %67 : vector<8x32xf32>
    %cst_31 = arith.constant 1.000000e+00 : f32
    %69 = vector.broadcast %cst_31 : f32 to vector<8x32xf32>
    %70 = arith.addf %69, %68 : vector<8x32xf32>
    %71 = arith.divf %69, %70 : vector<8x32xf32>
    %c0_32 = arith.constant 0 : index
    %c0_33 = arith.constant 0 : index
    %72 = vector.load %arg5[%c0_32, %c0_33] : memref<8x32xf32, #tpu.memory_space<vmem>>, vector<8x32xf32>
    %73 = arith.mulf %63, %72 : vector<8x32xf32>
    %74 = arith.mulf %57, %65 : vector<8x32xf32>
    %75 = arith.addf %73, %74 : vector<8x32xf32>
    %76 = math.tanh %75 : vector<8x32xf32>
    %77 = arith.mulf %71, %76 : vector<8x32xf32>
    %c0_34 = arith.constant 0 : index
    %c0_35 = arith.constant 0 : index
    %78 = vector.load %arg5[%c0_34, %c0_35] : memref<8x32xf32, #tpu.memory_space<vmem>>, vector<8x32xf32>
    tpu.vector_store %arg5[%c0_34, %c0_35], %75 {strides = array<i32>} : memref<8x32xf32, #tpu.memory_space<vmem>>, vector<8x32xf32>,
    %c0_36 = arith.constant 0 : index
    %c0_37 = arith.constant 0 : index
    %79 = vector.load %arg4[%c0_36, %c0_37] : memref<8x32xf32, #tpu.memory_space<vmem>>, vector<8x32xf32>
    tpu.vector_store %arg4[%c0_36, %c0_37], %77 {strides = array<i32>} : memref<8x32xf32, #tpu.memory_space<vmem>>, vector<8x32xf32>,
    %80 = arith.index_cast %c1_i32 : i32 to index
    %c0_38 = arith.constant 0 : index
    %c0_39 = arith.constant 0 : index
    %81 = vector.load %arg3[%80, %c0_38, %c0_39] : memref<4x8x32xf32, #tpu.memory_space<vmem>>, vector<1x8x32xf32>
    %82 = vector.shape_cast %81 : vector<1x8x32xf32> to vector<8x32xf32>
    %83 = vector.shape_cast %77 : vector<8x32xf32> to vector<1x8x32xf32>
    tpu.vector_store %arg3[%80, %c0_38, %c0_39], %83 {strides = array<i32>} : memref<4x8x32xf32, #tpu.memory_space<vmem>>, vector<1x8x32xf32>,
    %c2_i32 = arith.constant 2 : i32
    %84 = arith.index_cast %c2_i32 : i32 to index
    %c0_40 = arith.constant 0 : index
    %c0_41 = arith.constant 0 : index
    %85 = vector.load %arg1[%84, %c0_40, %c0_41] : memref<4x8x128xf32, #tpu.memory_space<vmem>>, vector<1x8x128xf32>
    %86 = vector.shape_cast %85 : vector<1x8x128xf32> to vector<8x128xf32>
    %c0_42 = arith.constant 0 : index
    %c0_43 = arith.constant 0 : index
    %87 = vector.load %arg4[%c0_42, %c0_43] : memref<8x32xf32, #tpu.memory_space<vmem>>, vector<8x32xf32>
    %88 = arith.truncf %87 : vector<8x32xf32> to vector<8x32xbf16>
    %c0_44 = arith.constant 0 : index
    %c0_45 = arith.constant 0 : index
    %89 = vector.load %arg2[%c0_44, %c0_45] : memref<32x128xbf16, #tpu.memory_space<vmem>>, vector<32x128xbf16>
    %cst_46 = arith.constant dense<0.000000e+00> : vector<8x128xf32>
    %90 = tpu.matmul %88, %89, %cst_46 {dimension_numbers = #tpu.dot_dimension_numbers<[1], [0], [0], [1], [0, 0, 1, 1], [], []>} : vector<8x32xbf16>, vector<32x128xbf16>, vector<8x128xf32> -> vector<8x128xf32>
    %91 = arith.addf %86, %90 : vector<8x128xf32>
    %92 = vector.extract_strided_slice %91 {offsets = [0, 0], sizes = [8, 32], strides = [1, 1]} : vector<8x128xf32> to vector<8x32xf32>
    %93 = arith.negf %92 : vector<8x32xf32>
    %94 = math.exp %93 : vector<8x32xf32>
    %cst_47 = arith.constant 1.000000e+00 : f32
    %95 = vector.broadcast %cst_47 : f32 to vector<8x32xf32>
    %96 = arith.addf %95, %94 : vector<8x32xf32>
    %97 = arith.divf %95, %96 : vector<8x32xf32>
    %98 = vector.extract_strided_slice %91 {offsets = [0, 32], sizes = [8, 32], strides = [1, 1]} : vector<8x128xf32> to vector<8x32xf32>
    %99 = arith.negf %98 : vector<8x32xf32>
    %100 = math.exp %99 : vector<8x32xf32>
    %cst_48 = arith.constant 1.000000e+00 : f32
    %101 = vector.broadcast %cst_48 : f32 to vector<8x32xf32>
    %102 = arith.addf %101, %100 : vector<8x32xf32>
    %103 = arith.divf %101, %102 : vector<8x32xf32>
    %104 = vector.extract_strided_slice %91 {offsets = [0, 64], sizes = [8, 32], strides = [1, 1]} : vector<8x128xf32> to vector<8x32xf32>
    %105 = math.tanh %104 : vector<8x32xf32>
    %106 = vector.extract_strided_slice %91 {offsets = [0, 96], sizes = [8, 32], strides = [1, 1]} : vector<8x128xf32> to vector<8x32xf32>
    %107 = arith.negf %106 : vector<8x32xf32>
    %108 = math.exp %107 : vector<8x32xf32>
    %cst_49 = arith.constant 1.000000e+00 : f32
    %109 = vector.broadcast %cst_49 : f32 to vector<8x32xf32>
    %110 = arith.addf %109, %108 : vector<8x32xf32>
    %111 = arith.divf %109, %110 : vector<8x32xf32>
    %c0_50 = arith.constant 0 : index
    %c0_51 = arith.constant 0 : index
    %112 = vector.load %arg5[%c0_50, %c0_51] : memref<8x32xf32, #tpu.memory_space<vmem>>, vector<8x32xf32>
    %113 = arith.mulf %103, %112 : vector<8x32xf32>
    %114 = arith.mulf %97, %105 : vector<8x32xf32>
    %115 = arith.addf %113, %114 : vector<8x32xf32>
    %116 = math.tanh %115 : vector<8x32xf32>
    %117 = arith.mulf %111, %116 : vector<8x32xf32>
    %c0_52 = arith.constant 0 : index
    %c0_53 = arith.constant 0 : index
    %118 = vector.load %arg5[%c0_52, %c0_53] : memref<8x32xf32, #tpu.memory_space<vmem>>, vector<8x32xf32>
    tpu.vector_store %arg5[%c0_52, %c0_53], %115 {strides = array<i32>} : memref<8x32xf32, #tpu.memory_space<vmem>>, vector<8x32xf32>,
    %c0_54 = arith.constant 0 : index
    %c0_55 = arith.constant 0 : index
    %119 = vector.load %arg4[%c0_54, %c0_55] : memref<8x32xf32, #tpu.memory_space<vmem>>, vector<8x32xf32>
    tpu.vector_store %arg4[%c0_54, %c0_55], %117 {strides = array<i32>} : memref<8x32xf32, #tpu.memory_space<vmem>>, vector<8x32xf32>,
    %120 = arith.index_cast %c2_i32 : i32 to index
    %c0_56 = arith.constant 0 : index
    %c0_57 = arith.constant 0 : index
    %121 = vector.load %arg3[%120, %c0_56, %c0_57] : memref<4x8x32xf32, #tpu.memory_space<vmem>>, vector<1x8x32xf32>
    %122 = vector.shape_cast %121 : vector<1x8x32xf32> to vector<8x32xf32>
    %123 = vector.shape_cast %117 : vector<8x32xf32> to vector<1x8x32xf32>
    tpu.vector_store %arg3[%120, %c0_56, %c0_57], %123 {strides = array<i32>} : memref<4x8x32xf32, #tpu.memory_space<vmem>>, vector<1x8x32xf32>,
    %c3_i32 = arith.constant 3 : i32
    %124 = arith.index_cast %c3_i32 : i32 to index
    %c0_58 = arith.constant 0 : index
    %c0_59 = arith.constant 0 : index
    %125 = vector.load %arg1[%124, %c0_58, %c0_59] : memref<4x8x128xf32, #tpu.memory_space<vmem>>, vector<1x8x128xf32>
    %126 = vector.shape_cast %125 : vector<1x8x128xf32> to vector<8x128xf32>
    %c0_60 = arith.constant 0 : index
    %c0_61 = arith.constant 0 : index
    %127 = vector.load %arg4[%c0_60, %c0_61] : memref<8x32xf32, #tpu.memory_space<vmem>>, vector<8x32xf32>
    %128 = arith.truncf %127 : vector<8x32xf32> to vector<8x32xbf16>
    %c0_62 = arith.constant 0 : index
    %c0_63 = arith.constant 0 : index
    %129 = vector.load %arg2[%c0_62, %c0_63] : memref<32x128xbf16, #tpu.memory_space<vmem>>, vector<32x128xbf16>
    %cst_64 = arith.constant dense<0.000000e+00> : vector<8x128xf32>
    %130 = tpu.matmul %128, %129, %cst_64 {dimension_numbers = #tpu.dot_dimension_numbers<[1], [0], [0], [1], [0, 0, 1, 1], [], []>} : vector<8x32xbf16>, vector<32x128xbf16>, vector<8x128xf32> -> vector<8x128xf32>
    %131 = arith.addf %126, %130 : vector<8x128xf32>
    %132 = vector.extract_strided_slice %131 {offsets = [0, 0], sizes = [8, 32], strides = [1, 1]} : vector<8x128xf32> to vector<8x32xf32>
    %133 = arith.negf %132 : vector<8x32xf32>
    %134 = math.exp %133 : vector<8x32xf32>
    %cst_65 = arith.constant 1.000000e+00 : f32
    %135 = vector.broadcast %cst_65 : f32 to vector<8x32xf32>
    %136 = arith.addf %135, %134 : vector<8x32xf32>
    %137 = arith.divf %135, %136 : vector<8x32xf32>
    %138 = vector.extract_strided_slice %131 {offsets = [0, 32], sizes = [8, 32], strides = [1, 1]} : vector<8x128xf32> to vector<8x32xf32>
    %139 = arith.negf %138 : vector<8x32xf32>
    %140 = math.exp %139 : vector<8x32xf32>
    %cst_66 = arith.constant 1.000000e+00 : f32
    %141 = vector.broadcast %cst_66 : f32 to vector<8x32xf32>
    %142 = arith.addf %141, %140 : vector<8x32xf32>
    %143 = arith.divf %141, %142 : vector<8x32xf32>
    %144 = vector.extract_strided_slice %131 {offsets = [0, 64], sizes = [8, 32], strides = [1, 1]} : vector<8x128xf32> to vector<8x32xf32>
    %145 = math.tanh %144 : vector<8x32xf32>
    %146 = vector.extract_strided_slice %131 {offsets = [0, 96], sizes = [8, 32], strides = [1, 1]} : vector<8x128xf32> to vector<8x32xf32>
    %147 = arith.negf %146 : vector<8x32xf32>
    %148 = math.exp %147 : vector<8x32xf32>
    %cst_67 = arith.constant 1.000000e+00 : f32
    %149 = vector.broadcast %cst_67 : f32 to vector<8x32xf32>
    %150 = arith.addf %149, %148 : vector<8x32xf32>
    %151 = arith.divf %149, %150 : vector<8x32xf32>
    %c0_68 = arith.constant 0 : index
    %c0_69 = arith.constant 0 : index
    %152 = vector.load %arg5[%c0_68, %c0_69] : memref<8x32xf32, #tpu.memory_space<vmem>>, vector<8x32xf32>
    %153 = arith.mulf %143, %152 : vector<8x32xf32>
    %154 = arith.mulf %137, %145 : vector<8x32xf32>
    %155 = arith.addf %153, %154 : vector<8x32xf32>
    %156 = math.tanh %155 : vector<8x32xf32>
    %157 = arith.mulf %151, %156 : vector<8x32xf32>
    %c0_70 = arith.constant 0 : index
    %c0_71 = arith.constant 0 : index
    %158 = vector.load %arg5[%c0_70, %c0_71] : memref<8x32xf32, #tpu.memory_space<vmem>>, vector<8x32xf32>
    tpu.vector_store %arg5[%c0_70, %c0_71], %155 {strides = array<i32>} : memref<8x32xf32, #tpu.memory_space<vmem>>, vector<8x32xf32>,
    %c0_72 = arith.constant 0 : index
    %c0_73 = arith.constant 0 : index
    %159 = vector.load %arg4[%c0_72, %c0_73] : memref<8x32xf32, #tpu.memory_space<vmem>>, vector<8x32xf32>
    tpu.vector_store %arg4[%c0_72, %c0_73], %157 {strides = array<i32>} : memref<8x32xf32, #tpu.memory_space<vmem>>, vector<8x32xf32>,
    %160 = arith.index_cast %c3_i32 : i32 to index
    %c0_74 = arith.constant 0 : index
    %c0_75 = arith.constant 0 : index
    %161 = vector.load %arg3[%160, %c0_74, %c0_75] : memref<4x8x32xf32, #tpu.memory_space<vmem>>, vector<1x8x32xf32>
    %162 = vector.shape_cast %161 : vector<1x8x32xf32> to vector<8x32xf32>
    %163 = vector.shape_cast %157 : vector<8x32xf32> to vector<1x8x32xf32>
    tpu.vector_store %arg3[%160, %c0_74, %c0_75], %163 {strides = array<i32>} : memref<4x8x32xf32, #tpu.memory_space<vmem>>, vector<1x8x32xf32>,
    %c4_i32 = arith.constant 4 : i32
    return
  }
  func.func @transform_0(%arg0: i32) -> (i32, i32, i32) {
    %c0_i32 = arith.constant 0 : i32
    %c0_i32_0 = arith.constant 0 : i32
    %c0_i32_1 = arith.constant 0 : i32
    %c0_i32_2 = arith.constant 0 : i32
    return %c0_i32, %c0_i32_0, %c0_i32_1 : i32, i32, i32
  }
  func.func @transform_1(%arg0: i32) -> (i32, i32) {
    %c0_i32 = arith.constant 0 : i32
    %c0_i32_0 = arith.constant 0 : i32
    %c0_i32_1 = arith.constant 0 : i32
    return %c0_i32, %c0_i32_0 : i32, i32
  }
  func.func @transform_2(%arg0: i32) -> (i32, i32, i32) {
    %c0_i32 = arith.constant 0 : i32
    %c0_i32_0 = arith.constant 0 : i32
    %c0_i32_1 = arith.constant 0 : i32
    %c0_i32_2 = arith.constant 0 : i32
    return %c0_i32, %c0_i32_0, %c0_i32_1 : i32, i32, i32
  }
}

module attributes {stable_mosaic.version = 11 : i64} {
  func.func @_heads_kernel(%arg0: i32, %arg1: memref<8x32xf32, #tpu.memory_space<vmem>>, %arg2: memref<32x12xbf16, #tpu.memory_space<vmem>>, %arg3: memref<1x12xf32, #tpu.memory_space<vmem>>, %arg4: memref<1x12xf32, #tpu.memory_space<vmem>>, %arg5: memref<8x12xf32, #tpu.memory_space<vmem>>) attributes {dimension_semantics = [#tpu.dimension_semantics<parallel>], iteration_bounds = array<i64: 1>, scalar_prefetch = 0 : i64, scratch_operands = 0 : i64, tpu.core_type = #tpu.core_type<tc>, window_params = [{transform_indices = @transform_0, window_bounds = array<i64: 8, 32>}, {pipeline_mode = #tpu.pipeline_mode<synchronous>, transform_indices = @transform_1, window_bounds = array<i64: 32, 12>}, {pipeline_mode = #tpu.pipeline_mode<synchronous>, transform_indices = @transform_2, window_bounds = array<i64: 1, 12>}, {pipeline_mode = #tpu.pipeline_mode<synchronous>, transform_indices = @transform_3, window_bounds = array<i64: 1, 12>}, {transform_indices = @transform_4, window_bounds = array<i64: 8, 12>}]} {
    %c0 = arith.constant 0 : index
    %c0_0 = arith.constant 0 : index
    %0 = vector.load %arg1[%c0, %c0_0] : memref<8x32xf32, #tpu.memory_space<vmem>>, vector<8x32xf32>
    %cst = arith.constant 0.000000e+00 : f32
    %cst_1 = arith.constant 6.000000e+00 : f32
    %1 = vector.broadcast %cst : f32 to vector<8x32xf32>
    %2 = arith.maximumf %1, %0 : vector<8x32xf32>
    %3 = vector.broadcast %cst_1 : f32 to vector<8x32xf32>
    %4 = arith.minimumf %3, %2 : vector<8x32xf32>
    %5 = arith.truncf %4 : vector<8x32xf32> to vector<8x32xbf16>
    %c0_2 = arith.constant 0 : index
    %c0_3 = arith.constant 0 : index
    %6 = vector.load %arg2[%c0_2, %c0_3] : memref<32x12xbf16, #tpu.memory_space<vmem>>, vector<32x12xbf16>
    %cst_4 = arith.constant dense<0.000000e+00> : vector<8x12xf32>
    %7 = tpu.matmul %5, %6, %cst_4 {dimension_numbers = #tpu.dot_dimension_numbers<[1], [0], [0], [1], [0, 0, 1, 1], [], []>} : vector<8x32xbf16>, vector<32x12xbf16>, vector<8x12xf32> -> vector<8x12xf32>
    %c0_5 = arith.constant 0 : index
    %c0_6 = arith.constant 0 : index
    %8 = vector.load %arg3[%c0_5, %c0_6] : memref<1x12xf32, #tpu.memory_space<vmem>>, vector<1x12xf32>
    %9 = vector.broadcast %8 : vector<1x12xf32> to vector<8x12xf32>
    %10 = arith.addf %7, %9 : vector<8x12xf32>
    %cst_7 = arith.constant 0.000000e+00 : f32
    %11 = vector.broadcast %cst_7 : f32 to vector<8x12xf32>
    %12 = arith.cmpf ogt, %10, %11 : vector<8x12xf32>
    %cst_8 = arith.constant 0.000000e+00 : f32
    %13 = vector.broadcast %cst_8 : f32 to vector<8x12xf32>
    %14 = arith.minimumf %10, %13 : vector<8x12xf32>
    %15 = math.exp %14 : vector<8x12xf32>
    %cst_9 = arith.constant 1.000000e+00 : f32
    %16 = vector.broadcast %cst_9 : f32 to vector<8x12xf32>
    %17 = arith.subf %15, %16 : vector<8x12xf32>
    %cst_10 = arith.constant 1.67326319 : f32
    %18 = vector.broadcast %cst_10 : f32 to vector<8x12xf32>
    %19 = arith.mulf %18, %17 : vector<8x12xf32>
    %20 = arith.select %12, %10, %19 : vector<8x12xi1>, vector<8x12xf32>
    %cst_11 = arith.constant 1.05070102 : f32
    %21 = vector.broadcast %cst_11 : f32 to vector<8x12xf32>
    %22 = arith.mulf %21, %20 : vector<8x12xf32>
    %23 = tpu.iota {dimensions = array<i32: 1>} : vector<8x12xi32>
    %c8_i32 = arith.constant 8 : i32
    %24 = vector.broadcast %c8_i32 : i32 to vector<8x12xi32>
    %25 = arith.cmpi slt, %23, %24 : vector<8x12xi32>
    %c0_12 = arith.constant 0 : index
    %c0_13 = arith.constant 0 : index
    %26 = vector.load %arg4[%c0_12, %c0_13] : memref<1x12xf32, #tpu.memory_space<vmem>>, vector<1x12xf32>
    %27 = vector.broadcast %26 : vector<1x12xf32> to vector<8x12xf32>
    %28 = arith.addf %22, %27 : vector<8x12xf32>
    %cst_14 = arith.constant 1.000000e-03 : f32
    %29 = vector.broadcast %cst_14 : f32 to vector<8x12xf32>
    %30 = arith.mulf %10, %29 : vector<8x12xf32>
    %31 = arith.select %25, %28, %30 : vector<8x12xi1>, vector<8x12xf32>
    %c0_15 = arith.constant 0 : index
    %c0_16 = arith.constant 0 : index
    %32 = vector.load %arg5[%c0_15, %c0_16] : memref<8x12xf32, #tpu.memory_space<vmem>>, vector<8x12xf32>
    tpu.vector_store %arg5[%c0_15, %c0_16], %31 {strides = array<i32>} : memref<8x12xf32, #tpu.memory_space<vmem>>, vector<8x12xf32>,
    return
  }
  func.func @transform_0(%arg0: i32) -> (i32, i32) {
    %c0_i32 = arith.constant 0 : i32
    %c0_i32_0 = arith.constant 0 : i32
    return %arg0, %c0_i32 : i32, i32
  }
  func.func @transform_1(%arg0: i32) -> (i32, i32) {
    %c0_i32 = arith.constant 0 : i32
    %c0_i32_0 = arith.constant 0 : i32
    %c0_i32_1 = arith.constant 0 : i32
    return %c0_i32, %c0_i32_0 : i32, i32
  }
  func.func @transform_2(%arg0: i32) -> (i32, i32) {
    %c0_i32 = arith.constant 0 : i32
    %c0_i32_0 = arith.constant 0 : i32
    %c0_i32_1 = arith.constant 0 : i32
    return %c0_i32, %c0_i32_0 : i32, i32
  }
  func.func @transform_3(%arg0: i32) -> (i32, i32) {
    %c0_i32 = arith.constant 0 : i32
    %c0_i32_0 = arith.constant 0 : i32
    %c0_i32_1 = arith.constant 0 : i32
    return %c0_i32, %c0_i32_0 : i32, i32
  }
  func.func @transform_4(%arg0: i32) -> (i32, i32) {
    %c0_i32 = arith.constant 0 : i32
    %c0_i32_0 = arith.constant 0 : i32
    return %arg0, %c0_i32 : i32, i32
  }
}

</mosaic_0001>

<bundles_post_ra>
// kernel: forward_dense.5
= control target key start
LH: loop header
LB: loop body
LE: loop exit
PB: predicated region body
PF: predicated region fallthrough
CT: control target
= control target key end

     0   :  { %vm1270_vm6 = vcmask 195584   ;;  %s2328_s1 = inlined_call_operand.vmem [shape: bf16[256,1176], index: 1, kind: input, shape index: {}]   ;;  %s2329_s0 = inlined_call_operand.vmem [shape: f32[8,256], index: 0, kind: input, shape index: {}]   ;;  %s2330_s2 = inlined_call_operand.vmem [shape: f32[1,1176], index: 2, kind: input, shape index: {}]   ;;  %s2331_s3 = inlined_call_operand.vmem [shape: f32[8,1176], index: 3, kind: output, shape index: {}]  }
   0x1   :  { %v1486_v0 = vld [vmem:[%s2328_s1 + $0x4] ss:$40 sps:$4 sm:$0xff]   ;;  %v1488_v1 = vld [vmem:[%s2328_s1] ss:$40 sps:$4 sm:$0xff]   ;;  %v1489_v2 = vld [vmem:[%s2328_s1 + $0x54] ss:$40 sps:$4 sm:$0xff]  }
   0x2   :  { %1036 = vmatprep.subr.bf16.mxu0 %v1486_v0  ;;  %v1491_v3 = vld [vmem:[%s2328_s1 + $0x50] ss:$40 sps:$4 sm:$0xff]   ;;  %v1492_v4 = vld [vmem:[%s2328_s1 + $0xa4] ss:$40 sps:$4 sm:$0xff]   ;;  %v1494_v5 = vld [vmem:[%s2328_s1 + $0xa0] ss:$40 sps:$4 sm:$0xff]  }
   0x3   :  { %1037 = vmatpush1.bf16.msra.mxu0 %v1488_v1  ;;  %v1495_v6 = vld [vmem:[%s2328_s1 + $0xf4] ss:$40 sps:$4 sm:$0xff]   ;;  %v1497_v7 = vld [vmem:[%s2328_s1 + $0xf0] ss:$40 sps:$4 sm:$0xff]   ;;  %v1498_v8 = vld [vmem:[%s2328_s1 + $0x144] ss:$40 sps:$4 sm:$0xff]  }
   0x4   :  { %1038 = vmatprep.subr.bf16.mxu0 %v1489_v2  ;;  %v1500_v9 = vld [vmem:[%s2328_s1 + $0x140] ss:$40 sps:$4 sm:$0xff]   ;;  %v1501_v10 = vld [vmem:[%s2328_s1 + $0x194] ss:$40 sps:$4 sm:$0xff]   ;;  %v1503_v11 = vld [vmem:[%s2328_s1 + $0x190] ss:$40 sps:$4 sm:$0xff]  }
   0x5   :  { %v1504_v12 = vld [vmem:[%s2328_s1 + $0x1e4] ss:$40 sps:$4 sm:$0xff]   ;;  %v1536_v14 = vld [vmem:[%s2328_s1 + $0x8] ss:$40 sps:$4 sm:$0xff]   ;;  %v1507_v18 = vld [vmem:[%s2328_s1 + $0x234] ss:$40 sps:$4 sm:$0xff]  }
   0x6   :  { %v1534_v13 = vld [vmem:[%s2328_s1 + $0xc] ss:$40 sps:$4 sm:$0xff]   ;;  %v1506_v16 = vld [vmem:[%s2328_s1 + $0x1e0] ss:$40 sps:$4 sm:$0xff]   ;;  %v1540_v20 = vld [vmem:[%s2328_s1 + $0x5c] ss:$40 sps:$4 sm:$0xff]  }
   0x7   :  { %1039 = vmatpush1.bf16.msra.mxu0 %v1491_v3  ;;  %v15_v15 = vld [vmem:[%s2329_s0 + $0x8] sm:$0xff]  ;;  %1077 = vmatprep.subr.bf16.mxu1 %v1534_v13  ;;  %v1542_v21 = vld [vmem:[%s2328_s1 + $0x58] ss:$40 sps:$4 sm:$0xff]   ;;  %v1513_v27 = vld [vmem:[%s2328_s1 + $0x2d4] ss:$40 sps:$4 sm:$0xff]  }
   0x8   :  { %1040 = vmatprep.subr.bf16.mxu0 %v1492_v4  ;;  %vm17_vm0 = vcmp.ne.f32.partialorder %v15_v15, %v15_v15  ;;  %v1797_v17 = vpack.c.bf16 %v15_v15, %v15_v15  ;;  %1078 = vmatpush1.bf16.msra.mxu1 %v1536_v14  ;;  %v1509_v22 = vld [vmem:[%s2328_s1 + $0x230] ss:$40 sps:$4 sm:$0xff]   ;;  %v1510_v23 = vld [vmem:[%s2328_s1 + $0x284] ss:$40 sps:$4 sm:$0xff]   ;;  %v1512_v26 = vld [vmem:[%s2328_s1 + $0x280] ss:$40 sps:$4 sm:$0xff]  }
   0x9   :  { %vm1436_vm1 = vmneg %vm17_vm0  ;;  %1079 = vmatprep.subr.bf16.mxu1 %v1540_v20  ;;  %v1546_v24 = vld [vmem:[%s2328_s1 + $0xac] ss:$40 sps:$4 sm:$0xff]   ;;  %v1548_v25 = vld [vmem:[%s2328_s1 + $0xa8] ss:$40 sps:$4 sm:$0xff]  }
   0xa   :  { %vm1802_vm2 = vmpackc.low %vm1436_vm1, %vm1436_vm1  ;;  %v1552_v28 = vld [vmem:[%s2328_s1 + $0xfc] ss:$40 sps:$4 sm:$0xff]   ;;  %v1554_v29 = vld [vmem:[%s2328_s1 + $0xf8] ss:$40 sps:$4 sm:$0xff]  }
   0xb   :  { %1041 = vmatpush1.bf16.msra.mxu0 %v1494_v5  ;;  %1440 = vmatprep.mubr.msk.bf16.mxu0 %vm1802_vm2, %v1797_v17  ;;  %v1558_v30 = vld [vmem:[%s2328_s1 + $0x14c] ss:$40 sps:$4 sm:$0xff]   ;;  %v1515_v31 = vld [vmem:[%s2328_s1 + $0x2d0] ss:$40 sps:$4 sm:$0xff]   ;;  %v1564_v34 = vld [vmem:[%s2328_s1 + $0x19c] ss:$40 sps:$4 sm:$0xff]  }
   0xc   :  { %1042 = vmatprep.subr.bf16.mxu0 %v1495_v6  ;;  %1450 = vmatprep.mubr.msk.bf16.mxu1 %vm1802_vm2, %v1797_v17  ;;  %v1516_v32 = vld [vmem:[%s2328_s1 + $0x324] ss:$40 sps:$4 sm:$0xff]   ;;  %v1560_v33 = vld [vmem:[%s2328_s1 + $0x148] ss:$40 sps:$4 sm:$0xff]   ;;  %v1519_v36 = vld [vmem:[%s2328_s1 + $0x374] ss:$40 sps:$4 sm:$0xff]  }
   0xd   :  { %1080 = vmatpush1.bf16.msra.mxu1 %v1542_v21  ;;  %v1518_v35 = vld [vmem:[%s2328_s1 + $0x320] ss:$40 sps:$4 sm:$0xff]   ;;  %v1570_v38 = vld [vmem:[%s2328_s1 + $0x1ec] ss:$40 sps:$4 sm:$0xff]   ;;  %v1521_v39 = vld [vmem:[%s2328_s1 + $0x370] ss:$40 sps:$4 sm:$0xff]  }
   0xe   :  { %1081 = vmatprep.subr.bf16.mxu1 %v1546_v24  ;;  %v1566_v37 = vld [vmem:[%s2328_s1 + $0x198] ss:$40 sps:$4 sm:$0xff]   ;;  %v1522_v40 = vld [vmem:[%s2328_s1 + $0x3c4] ss:$40 sps:$4 sm:$0xff]   ;;  %v1572_v41 = vld [vmem:[%s2328_s1 + $0x1e8] ss:$40 sps:$4 sm:$0xff]  }
   0xf   :  { %1043 = vmatpush1.bf16.msra.mxu0 %v1497_v7  ;;  %v1576_v42 = vld [vmem:[%s2328_s1 + $0x23c] ss:$40 sps:$4 sm:$0xff]   ;;  %v1524_v43 = vld [vmem:[%s2328_s1 + $0x3c0] ss:$40 sps:$4 sm:$0xff]   ;;  %v1582_v46 = vld [vmem:[%s2328_s1 + $0x28c] ss:$40 sps:$4 sm:$0xff]  }
  0x10   :  { %1044 = vmatprep.subr.bf16.mxu0 %v1498_v8  ;;  %v1525_v44 = vld [vmem:[%s2328_s1 + $0x414] ss:$40 sps:$4 sm:$0xff]   ;;  %v1578_v45 = vld [vmem:[%s2328_s1 + $0x238] ss:$40 sps:$4 sm:$0xff]   ;;  %v1528_v48 = vld [vmem:[%s2328_s1 + $0x464] ss:$40 sps:$4 sm:$0xff]  }
  0x11   :  { %1082 = vmatpush1.bf16.msra.mxu1 %v1548_v25  ;;  %v1527_v47 = vld [vmem:[%s2328_s1 + $0x410] ss:$40 sps:$4 sm:$0xff]   ;;  %v14_v49 = vld [vmem:[%s2329_s0] sm:$0xff]  ;;  %v1531_v53 = vld [vmem:[%s2328_s1 + $0x4b4] ss:$40 sps:$4 sm:$0xff]  }
  0x12   :  { %1083 = vmatprep.subr.bf16.mxu1 %v1552_v28  ;;  %v1584_v50 = vld [vmem:[%s2328_s1 + $0x288] ss:$40 sps:$4 sm:$0xff]   ;;  %v1588_v51 = vld [vmem:[%s2328_s1 + $0x2dc] ss:$40 sps:$4 sm:$0xff]   ;;  %vm16_vm3 = vcmp.ne.f32.partialorder %v14_v49, %v14_v49  ;;  %v1590_v54 = vld [vmem:[%s2328_s1 + $0x2d8] ss:$40 sps:$4 sm:$0xff]   ;;  %v1932_v60 = vpack.c.bf16 %v14_v49, %v14_v49 }
  0x13   :  { %1045 = vmatpush1.bf16.msra.mxu0 %v1500_v9  ;;  %v1530_v52 = vld [vmem:[%s2328_s1 + $0x460] ss:$40 sps:$4 sm:$0xff]   ;;  %v1594_v55 = vld [vmem:[%s2328_s1 + $0x32c] ss:$40 sps:$4 sm:$0xff]   ;;  %v1533_v56 = vld [vmem:[%s2328_s1 + $0x4b0] ss:$40 sps:$4 sm:$0xff]  }
  0x14   :  { %1046 = vmatprep.subr.bf16.mxu0 %v1501_v10  ;;  %vm1441_vm4 = vmneg %vm16_vm3  ;;  %v1539_v57 = vld [vmem:[%s2328_s1 + $0x14] ss:$40 sps:$4 sm:$0xff]   ;;  %v1537_v58 = vld [vmem:[%s2328_s1 + $0x10] ss:$40 sps:$4 sm:$0xff]  }
  0x15   :  { %1084 = vmatpush1.bf16.msra.mxu1 %v1554_v29  ;;  %v1596_v59 = vld [vmem:[%s2328_s1 + $0x328] ss:$40 sps:$4 sm:$0xff]   ;;  %v1600_v61 = vld [vmem:[%s2328_s1 + $0x37c] ss:$40 sps:$4 sm:$0xff]   ;;  %vm1937_vm5 = vmpackc.low %vm1441_vm4, %vm1441_vm4 }
  0x16   :  { %1085 = vmatprep.subr.bf16.mxu1 %v1558_v30  ;;  %v1545_v63 = vld [vmem:[%s2328_s1 + $0x64] ss:$40 sps:$4 sm:$0xff]   ;;  %v1602_v0 = vld [vmem:[%s2328_s1 + $0x378] ss:$40 sps:$4 sm:$0xff]   ;;  %v1551_v3 = vld [vmem:[%s2328_s1 + $0xb4] ss:$40 sps:$4 sm:$0xff]  }
  0x17   :  { %1047 = vmatpush1.bf16.msra.mxu0 %v1503_v11  ;;  %v1606_v1 = vld [vmem:[%s2328_s1 + $0x3cc] ss:$40 sps:$4 sm:$0xff]   ;;  %v1543_v2 = vld [vmem:[%s2328_s1 + $0x60] ss:$40 sps:$4 sm:$0xff]   ;;  %v1612_v5 = vld [vmem:[%s2328_s1 + $0x41c] ss:$40 sps:$4 sm:$0xff]  }
  0x18   :  { %1048 = vmatprep.subr.bf16.mxu0 %v1504_v12  ;;  %v1608_v4 = vld [vmem:[%s2328_s1 + $0x3c8] ss:$40 sps:$4 sm:$0xff]   ;;  %v1557_v7 = vld [vmem:[%s2328_s1 + $0x104] ss:$40 sps:$4 sm:$0xff]   ;;  %v1614_v8 = vld [vmem:[%s2328_s1 + $0x418] ss:$40 sps:$4 sm:$0xff]  }
  0x19   :  { %1086 = vmatpush1.bf16.msra.mxu1 %v1560_v33  ;;  %v1549_v6 = vld [vmem:[%s2328_s1 + $0xb0] ss:$40 sps:$4 sm:$0xff]   ;;  %v1618_v9 = vld [vmem:[%s2328_s1 + $0x46c] ss:$40 sps:$4 sm:$0xff]   ;;  %v1555_v10 = vld [vmem:[%s2328_s1 + $0x100] ss:$40 sps:$4 sm:$0xff]  }
  0x1a   :  { %1087 = vmatprep.subr.bf16.mxu1 %v1564_v34  ;;  %v1563_v11 = vld [vmem:[%s2328_s1 + $0x154] ss:$40 sps:$4 sm:$0xff]   ;;  %v1620_v12 = vld [vmem:[%s2328_s1 + $0x468] ss:$40 sps:$4 sm:$0xff]   ;;  %v1569_v15 = vld [vmem:[%s2328_s1 + $0x1a4] ss:$40 sps:$4 sm:$0xff]  }
  0x1b   :  { %1049 = vmatpush1.bf16.msra.mxu0 %v1506_v16  ;;  %v1624_v13 = vld [vmem:[%s2328_s1 + $0x4bc] ss:$40 sps:$4 sm:$0xff]   ;;  %v1561_v14 = vld [vmem:[%s2328_s1 + $0x150] ss:$40 sps:$4 sm:$0xff]   ;;  %v1567_v20 = vld [vmem:[%s2328_s1 + $0x1a0] ss:$40 sps:$4 sm:$0xff]  }
  0x1c   :  { %1050 = vmatprep.subr.bf16.mxu0 %v1507_v18  ;;  %v1626_v16 = vld [vmem:[%s2328_s1 + $0x4b8] ss:$40 sps:$4 sm:$0xff]   ;;  %v1632_v18 = vld [vmem:[%s2328_s1 + $0x1c] ss:$40 sps:$4 sm:$0xff]   ;;  %v1648_v34 = vld [vmem:[%s2328_s1 + $0x108] ss:$40 sps:$4 sm:$0xff]  }
  0x1d   :  { %1088 = vmatpush1.bf16.msra.mxu1 %v1566_v37  ;;  %v1575_v21 = vld [vmem:[%s2328_s1 + $0x1f4] ss:$40 sps:$4 sm:$0xff]   ;;  %v1573_v24 = vld [vmem:[%s2328_s1 + $0x1f0] ss:$40 sps:$4 sm:$0xff]   ;;  %v1581_v25 = vld [vmem:[%s2328_s1 + $0x244] ss:$40 sps:$4 sm:$0xff]  }
  0x1e   :  { %1089 = vmatprep.subr.bf16.mxu1 %v1570_v38  ;;  %v1579_v28 = vld [vmem:[%s2328_s1 + $0x240] ss:$40 sps:$4 sm:$0xff]   ;;  %v1587_v29 = vld [vmem:[%s2328_s1 + $0x294] ss:$40 sps:$4 sm:$0xff]   ;;  %v1593_v33 = vld [vmem:[%s2328_s1 + $0x2e4] ss:$40 sps:$4 sm:$0xff]  }
  0x1f   :  { %1051 = vmatpush1.bf16.msra.mxu0 %v1509_v22  ;;  %v1630_v22 = vld [vmem:[%s2328_s1 + $0x18] ss:$40 sps:$4 sm:$0xff]   ;;  %v1599_v37 = vld [vmem:[%s2328_s1 + $0x334] ss:$40 sps:$4 sm:$0xff]   ;;  %v1617_v49 = vld [vmem:[%s2328_s1 + $0x424] ss:$40 sps:$4 sm:$0xff]  }
  0x20   :  { %1052 = vmatprep.subr.bf16.mxu0 %v1510_v23  ;;  %v1638_v23 = vld [vmem:[%s2328_s1 + $0x6c] ss:$40 sps:$4 sm:$0xff]   ;;  %v1642_v30 = vld [vmem:[%s2328_s1 + $0xb8] ss:$40 sps:$4 sm:$0xff]  }
  0x21   :  { %1090 = vmatpush1.bf16.msra.mxu1 %v1572_v41  ;;  %v1654_v38 = vld [vmem:[%s2328_s1 + $0x158] ss:$40 sps:$4 sm:$0xff]   ;;  %v1605_v41 = vld [vmem:[%s2328_s1 + $0x384] ss:$40 sps:$4 sm:$0xff]   ;;  %v1653_v19 = vld [vmem:[%s2328_s1 + $0x114] ss:$40 sps:$4 sm:$0xff]  }
  0x22   :  { %1091 = vmatprep.subr.bf16.mxu1 %v1576_v42  ;;  %v1660_v42 = vld [vmem:[%s2328_s1 + $0x1a8] ss:$40 sps:$4 sm:$0xff]  }
  0x23   :  { %1053 = vmatpush1.bf16.msra.mxu0 %v1512_v26  ;;  %v1636_v26 = vld [vmem:[%s2328_s1 + $0x68] ss:$40 sps:$4 sm:$0xff]  }
  0x24   :  { %1054 = vmatprep.subr.bf16.mxu0 %v1513_v27  ;;  %v1644_v27 = vld [vmem:[%s2328_s1 + $0xbc] ss:$40 sps:$4 sm:$0xff]  }
  0x25   :  { %1092 = vmatpush1.bf16.msra.mxu1 %v1578_v45  ;;  %v1611_v45 = vld [vmem:[%s2328_s1 + $0x3d4] ss:$40 sps:$4 sm:$0xff]  }
  0x26   :  { %1093 = vmatprep.subr.bf16.mxu1 %v1582_v46  ;;  %v1666_v46 = vld [vmem:[%s2328_s1 + $0x1f8] ss:$40 sps:$4 sm:$0xff]  }
  0x27   :  { %1055 = vmatpush1.bf16.msra.mxu0 %v1515_v31  ;;  %v1650_v31 = vld [vmem:[%s2328_s1 + $0x10c] ss:$40 sps:$4 sm:$0xff]  }
  0x28   :  { %1056 = vmatprep.subr.bf16.mxu0 %v1516_v32  ;;  %v1585_v32 = vld [vmem:[%s2328_s1 + $0x290] ss:$40 sps:$4 sm:$0xff]  }
  0x29   :  { %1094 = vmatpush1.bf16.msra.mxu1 %v1584_v50  ;;  %v1672_v50 = vld [vmem:[%s2328_s1 + $0x248] ss:$40 sps:$4 sm:$0xff]  }
  0x2a   :  { %1095 = vmatprep.subr.bf16.mxu1 %v1588_v51  ;;  %v1680_v51 = vld [vmem:[%s2328_s1 + $0x29c] ss:$40 sps:$4 sm:$0xff]  }
  0x2b   :  { %1057 = vmatpush1.bf16.msra.mxu0 %v1518_v35  ;;  %v1656_v35 = vld [vmem:[%s2328_s1 + $0x15c] ss:$40 sps:$4 sm:$0xff]  }
  0x2c   :  { %1058 = vmatprep.subr.bf16.mxu0 %v1519_v36  ;;  %v1591_v36 = vld [vmem:[%s2328_s1 + $0x2e0] ss:$40 sps:$4 sm:$0xff]  }
  0x2d   :  { %1096 = vmatpush1.bf16.msra.mxu1 %v1590_v54  ;;  %v1678_v54 = vld [vmem:[%s2328_s1 + $0x298] ss:$40 sps:$4 sm:$0xff]  }
  0x2e   :  { %1097 = vmatprep.subr.bf16.mxu1 %v1594_v55  ;;  %v1686_v55 = vld [vmem:[%s2328_s1 + $0x2ec] ss:$40 sps:$4 sm:$0xff]  }
  0x2f   :  { %1059 = vmatpush1.bf16.msra.mxu0 %v1521_v39  ;;  %v1662_v39 = vld [vmem:[%s2328_s1 + $0x1ac] ss:$40 sps:$4 sm:$0xff]  }
  0x30   :  { %1060 = vmatprep.subr.bf16.mxu0 %v1522_v40  ;;  %v1597_v40 = vld [vmem:[%s2328_s1 + $0x330] ss:$40 sps:$4 sm:$0xff]  }
  0x31   :  { %1098 = vmatpush1.bf16.msra.mxu1 %v1596_v59  ;;  %v1692_v59 = vld [vmem:[%s2328_s1 + $0x33c] ss:$40 sps:$4 sm:$0xff]  }
  0x32   :  { %1099 = vmatprep.subr.bf16.mxu1 %v1600_v61  ;;  %v1627_v61 = vld [vmem:[%s2328_s1 + $0x4c0] ss:$40 sps:$4 sm:$0xff]  }
  0x33   :  { %1061 = vmatpush1.bf16.msra.mxu0 %v1524_v43  ;;  %v1668_v43 = vld [vmem:[%s2328_s1 + $0x1fc] ss:$40 sps:$4 sm:$0xff]  }
  0x34   :  { %1062 = vmatprep.subr.bf16.mxu0 %v1525_v44  ;;  %v1603_v44 = vld [vmem:[%s2328_s1 + $0x380] ss:$40 sps:$4 sm:$0xff]  }
  0x35   :  { %1100 = vmatpush1.bf16.msra.mxu1 %v1602_v0  ;;  %v1690_v0 = vld [vmem:[%s2328_s1 + $0x338] ss:$40 sps:$4 sm:$0xff]  }
  0x36   :  { %1101 = vmatprep.subr.bf16.mxu1 %v1606_v1  ;;  %v1698_v1 = vld [vmem:[%s2328_s1 + $0x38c] ss:$40 sps:$4 sm:$0xff]  }
  0x37   :  { %1063 = vmatpush1.bf16.msra.mxu0 %v1527_v47  ;;  %v1674_v47 = vld [vmem:[%s2328_s1 + $0x24c] ss:$40 sps:$4 sm:$0xff]  }
  0x38   :  { %1064 = vmatprep.subr.bf16.mxu0 %v1528_v48  ;;  %v1609_v48 = vld [vmem:[%s2328_s1 + $0x3d0] ss:$40 sps:$4 sm:$0xff]  }
  0x39   :  { %1102 = vmatpush1.bf16.msra.mxu1 %v1608_v4  ;;  %v1696_v4 = vld [vmem:[%s2328_s1 + $0x388] ss:$40 sps:$4 sm:$0xff]  }
  0x3a   :  { %1103 = vmatprep.subr.bf16.mxu1 %v1612_v5  ;;  %v1704_v5 = vld [vmem:[%s2328_s1 + $0x3dc] ss:$40 sps:$4 sm:$0xff]  }
  0x3b   :  { %1065 = vmatpush1.bf16.msra.mxu0 %v1530_v52  ;;  %v1615_v52 = vld [vmem:[%s2328_s1 + $0x420] ss:$40 sps:$4 sm:$0xff]  }
  0x3c   :  { %1066 = vmatprep.subr.bf16.mxu0 %v1531_v53  ;;  %v1623_v53 = vld [vmem:[%s2328_s1 + $0x474] ss:$40 sps:$4 sm:$0xff]  }
  0x3d   :  { %1104 = vmatpush1.bf16.msra.mxu1 %v1614_v8  ;;  %v1702_v8 = vld [vmem:[%s2328_s1 + $0x3d8] ss:$40 sps:$4 sm:$0xff]  }
  0x3e   :  { %1105 = vmatprep.subr.bf16.mxu1 %v1618_v9  ;;  %v1710_v9 = vld [vmem:[%s2328_s1 + $0x42c] ss:$40 sps:$4 sm:$0xff]  }
  0x3f   :  { %1067 = vmatpush1.bf16.msra.mxu0 %v1533_v56  ;;  %v1621_v56 = vld [vmem:[%s2328_s1 + $0x470] ss:$40 sps:$4 sm:$0xff]  }
  0x40   :  { %1118 = vmatprep.subr.bf16.mxu0 %v1539_v57  ;;  %v1629_v57 = vld [vmem:[%s2328_s1 + $0x4c4] ss:$40 sps:$4 sm:$0xff]  }
  0x41   :  { %1106 = vmatpush1.bf16.msra.mxu1 %v1620_v12  ;;  %v1651_v12 = vld [vmem:[%s2328_s1 + $0x110] ss:$40 sps:$4 sm:$0xff]  }
  0x42   :  { %1445 = vmatmul.mubr.msk.bf16.vlgmr.msra.gmra.mrb[0].mxu0 %vm1937_vm5, %v1932_v60  ;;  %1107 = vmatprep.subr.bf16.mxu1 %v1624_v13  ;;  %v1659_v13 = vld [vmem:[%s2328_s1 + $0x164] ss:$40 sps:$4 sm:$0xff]  }
  0x43   :  { %1119 = vmatpush1.bf16.msra.mxu0 %v1537_v58  ;;  %1460 = vmatprep.mubr.msk.bf16.mxu0 %vm1802_vm2, %v1797_v17  ;;  %v1684_v58 = vld [vmem:[%s2328_s1 + $0x2e8] ss:$40 sps:$4 sm:$0xff]  }
  0x44   :  { %1120 = vmatprep.subr.bf16.mxu0 %v1545_v63  ;;  %v1635_v63 = vld [vmem:[%s2328_s1 + $0x24] ss:$40 sps:$4 sm:$0xff]  }
  0x45   :  { %1108 = vmatpush1.bf16.msra.mxu1 %v1626_v16  ;;  %v1657_v16 = vld [vmem:[%s2328_s1 + $0x160] ss:$40 sps:$4 sm:$0xff]  }
  0x46   :  { %1159 = vmatprep.subr.bf16.mxu1 %v1632_v18  ;;  %v1665_v18 = vld [vmem:[%s2328_s1 + $0x1b4] ss:$40 sps:$4 sm:$0xff]  }
  0x47   :  { %1121 = vmatpush1.bf16.msra.mxu0 %v1543_v2  ;;  %v1633_v2 = vld [vmem:[%s2328_s1 + $0x20] ss:$40 sps:$4 sm:$0xff]  }
  0x48   :  { %1122 = vmatprep.subr.bf16.mxu0 %v1551_v3  ;;  %1455 = vmatmul.mubr.msk.bf16.vlgmr.msra.gmra.mrb[0].mxu1 %vm1937_vm5, %v1932_v60  ;;  %v1641_v3 = vld [vmem:[%s2328_s1 + $0x74] ss:$40 sps:$4 sm:$0xff]  }
  0x49   :  { %1160 = vmatpush1.bf16.msra.mxu1 %v1630_v22  ;;  %1470 = vmatprep.mubr.msk.bf16.mxu1 %vm1802_vm2, %v1797_v17  ;;  %v1671_v22 = vld [vmem:[%s2328_s1 + $0x204] ss:$40 sps:$4 sm:$0xff]  }
  0x4a   :  { %1161 = vmatprep.subr.bf16.mxu1 %v1638_v23  ;;  %v1669_v23 = vld [vmem:[%s2328_s1 + $0x200] ss:$40 sps:$4 sm:$0xff]  }
  0x4b   :  { %1123 = vmatpush1.bf16.msra.mxu0 %v1549_v6  ;;  %v1639_v6 = vld [vmem:[%s2328_s1 + $0x70] ss:$40 sps:$4 sm:$0xff]  }
  0x4c   :  { %1124 = vmatprep.subr.bf16.mxu0 %v1557_v7  ;;  %v1647_v7 = vld [vmem:[%s2328_s1 + $0xc4] ss:$40 sps:$4 sm:$0xff]  }
  0x4d   :  { %1162 = vmatpush1.bf16.msra.mxu1 %v1636_v26  ;;  %v1683_v26 = vld [vmem:[%s2328_s1 + $0x2a4] ss:$40 sps:$4 sm:$0xff]  }
  0x4e   :  { %1163 = vmatprep.subr.bf16.mxu1 %v1644_v27  ;;  %v1681_v27 = vld [vmem:[%s2328_s1 + $0x2a0] ss:$40 sps:$4 sm:$0xff]  }
  0x4f   :  { %1125 = vmatpush1.bf16.msra.mxu0 %v1555_v10  ;;  %v1708_v10 = vld [vmem:[%s2328_s1 + $0x428] ss:$40 sps:$4 sm:$0xff]  }
  0x50   :  { %1126 = vmatprep.subr.bf16.mxu0 %v1563_v11  ;;  %v1716_v11 = vld [vmem:[%s2328_s1 + $0x47c] ss:$40 sps:$4 sm:$0xff]  }
  0x51   :  { %1164 = vmatpush1.bf16.msra.mxu1 %v1642_v30  ;;  %v1695_v30 = vld [vmem:[%s2328_s1 + $0x344] ss:$40 sps:$4 sm:$0xff]  }
  0x52   :  { %1165 = vmatprep.subr.bf16.mxu1 %v1650_v31  ;;  %v1693_v31 = vld [vmem:[%s2328_s1 + $0x340] ss:$40 sps:$4 sm:$0xff]  }
  0x53   :  { %1127 = vmatpush1.bf16.msra.mxu0 %v1561_v14  ;;  %v1714_v14 = vld [vmem:[%s2328_s1 + $0x478] ss:$40 sps:$4 sm:$0xff]  }
  0x54   :  { %1128 = vmatprep.subr.bf16.mxu0 %v1569_v15  ;;  %v1722_v15 = vld [vmem:[%s2328_s1 + $0x4cc] ss:$40 sps:$4 sm:$0xff]  }
  0x55   :  { %1166 = vmatpush1.bf16.msra.mxu1 %v1648_v34  ;;  %v1707_v34 = vld [vmem:[%s2328_s1 + $0x3e4] ss:$40 sps:$4 sm:$0xff]  }
  0x56   :  { %1167 = vmatprep.subr.bf16.mxu1 %v1656_v35  ;;  %v1705_v35 = vld [vmem:[%s2328_s1 + $0x3e0] ss:$40 sps:$4 sm:$0xff]  }
  0x57   :  { %1129 = vmatpush1.bf16.msra.mxu0 %v1567_v20  ;;  %v1720_v20 = vld [vmem:[%s2328_s1 + $0x4c8] ss:$40 sps:$4 sm:$0xff]  }
  0x58   :  { %1130 = vmatprep.subr.bf16.mxu0 %v1575_v21  ;;  %v1663_v21 = vld [vmem:[%s2328_s1 + $0x1b0] ss:$40 sps:$4 sm:$0xff]  }
  0x59   :  { %1168 = vmatpush1.bf16.msra.mxu1 %v1654_v38  ;;  %v1719_v38 = vld [vmem:[%s2328_s1 + $0x484] ss:$40 sps:$4 sm:$0xff]  }
  0x5a   :  { %1169 = vmatprep.subr.bf16.mxu1 %v1662_v39  ;;  %v1717_v39 = vld [vmem:[%s2328_s1 + $0x480] ss:$40 sps:$4 sm:$0xff]  }
  0x5b   :  { %1131 = vmatpush1.bf16.msra.mxu0 %v1573_v24  ;;  %v1677_v24 = vld [vmem:[%s2328_s1 + $0x254] ss:$40 sps:$4 sm:$0xff]  }
  0x5c   :  { %1132 = vmatprep.subr.bf16.mxu0 %v1581_v25  ;;  %v1675_v25 = vld [vmem:[%s2328_s1 + $0x250] ss:$40 sps:$4 sm:$0xff]  }
  0x5d   :  { %1170 = vmatpush1.bf16.msra.mxu1 %v1660_v42  ;;  %v186_v42 = vlaneseq }
  0x5e   :  { %1171 = vmatprep.subr.bf16.mxu1 %v1668_v43 }
  0x5f   :  { %1133 = vmatpush1.bf16.msra.mxu0 %v1579_v28  ;;  %v1689_v28 = vld [vmem:[%s2328_s1 + $0x2f4] ss:$40 sps:$4 sm:$0xff]   ;;  %v2274_v43 = vshrl.u32 %v186_v42, 7 }
  0x60   :  { %1134 = vmatprep.subr.bf16.mxu0 %v1587_v29  ;;  %v1687_v29 = vld [vmem:[%s2328_s1 + $0x2f0] ss:$40 sps:$4 sm:$0xff]  }
  0x61   :  { %1172 = vmatpush1.bf16.msra.mxu1 %v1666_v46  ;;  %v192_v46 = vsub.s32 1, %v2274_v43 }
  0x62   :  { %1173 = vmatprep.subr.bf16.mxu1 %v1674_v47 }
  0x63   :  { %1135 = vmatpush1.bf16.msra.mxu0 %v1585_v32  ;;  %v1701_v32 = vld [vmem:[%s2328_s1 + $0x394] ss:$40 sps:$4 sm:$0xff]  }
  0x64   :  { %1136 = vmatprep.subr.bf16.mxu0 %v1593_v33  ;;  %v1699_v33 = vld [vmem:[%s2328_s1 + $0x390] ss:$40 sps:$4 sm:$0xff]  }
  0x65   :  { %1174 = vmatpush1.bf16.msra.mxu1 %v1672_v50 }
  0x66   :  { %1175 = vmatprep.subr.bf16.mxu1 %v1680_v51 }
  0x67   :  { %1137 = vmatpush1.bf16.msra.mxu0 %v1591_v36  ;;  %v1713_v36 = vld [vmem:[%s2328_s1 + $0x434] ss:$40 sps:$4 sm:$0xff]  }
  0x68   :  { %1138 = vmatprep.subr.bf16.mxu0 %v1599_v37  ;;  %v1711_v37 = vld [vmem:[%s2328_s1 + $0x430] ss:$40 sps:$4 sm:$0xff]  }
  0x69   :  { %1176 = vmatpush1.bf16.msra.mxu1 %v1678_v54 }
  0x6a   :  { %1177 = vmatprep.subr.bf16.mxu1 %v1686_v55 }
  0x6b   :  { %1139 = vmatpush1.bf16.msra.mxu0 %v1597_v40  ;;  %v1725_v40 = vld [vmem:[%s2328_s1 + $0x4d4] ss:$40 sps:$4 sm:$0xff]  }
  0x6c   :  { %1140 = vmatprep.subr.bf16.mxu0 %v1605_v41  ;;  %v1723_v41 = vld [vmem:[%s2328_s1 + $0x4d0] ss:$40 sps:$4 sm:$0xff]  }
  0x6d   :  { %1178 = vmatpush1.bf16.msra.mxu1 %v1684_v58  ;;  %v200_v58 = vsub.s32 3, %v2274_v43 }
  0x6e   :  { %1179 = vmatprep.subr.bf16.mxu1 %v1692_v59 }
  0x6f   :  { %1141 = vmatpush1.bf16.msra.mxu0 %v1603_v44  ;;  %v188_v44 = vsub.s32 0, %v2274_v43 }
  0x70   :  { %1142 = vmatprep.subr.bf16.mxu0 %v1611_v45  ;;  %v182_v45 = vld [vmem:[%s2330_s2] sm:$0xff] }
  0x71   :  { %1180 = vmatpush1.bf16.msra.mxu1 %v1690_v0  ;;  %v189_v47 = vrot.slane %v182_v45, %v188_v44 }
  0x72   :  { %1181 = vmatprep.subr.bf16.mxu1 %v1698_v1 }
  0x73   :  { %1143 = vmatpush1.bf16.msra.mxu0 %v1609_v48  ;;  %v193_v48 = vrot.slane %v182_v45, %v192_v46 }
  0x74   :  { %1144 = vmatprep.subr.bf16.mxu0 %v1617_v49 }
  0x75   :  { %1182 = vmatpush1.bf16.msra.mxu1 %v1696_v4 }
  0x76   :  { %1183 = vmatprep.subr.bf16.mxu1 %v1704_v5 }
  0x77   :  { %1145 = vmatpush1.bf16.msra.mxu0 %v1615_v52 }
  0x78   :  { %1146 = vmatprep.subr.bf16.mxu0 %v1623_v53 }
  0x79   :  { %1184 = vmatpush1.bf16.msra.mxu1 %v1702_v8 }
  0x7a   :  { %1185 = vmatprep.subr.bf16.mxu1 %v1710_v9  ;;  %v204_v9 = vsub.s32 4, %v2274_v43 }
  0x7b   :  { %1147 = vmatpush1.bf16.msra.mxu0 %v1621_v56 }
  0x7c   :  { %1148 = vmatprep.subr.bf16.mxu0 %v1629_v57  ;;  %v196_v57 = vsub.s32 2, %v2274_v43 }
  0x7d   :  { %1186 = vmatpush1.bf16.msra.mxu1 %v1708_v10 }
  0x7e   :  { %1187 = vmatprep.subr.bf16.mxu1 %v1716_v11  ;;  %v197_v59 = vrot.slane %v182_v45, %v196_v57 }
  0x7f   :  { %1149 = vmatpush1.bf16.msra.mxu0 %v1627_v61  ;;  %v201_v61 = vrot.slane %v182_v45, %v200_v58 }
  0x80   :  { %1200 = vmatprep.subr.bf16.mxu0 %v1635_v63 }
  0x81   :  { %1188 = vmatpush1.bf16.msra.mxu1 %v1714_v14 }
  0x82   :  { %1465 = vmatmul.mubr.msk.bf16.vlgmr.msra.gmra.mrb[4].mxu0 %vm1937_vm5, %v1932_v60  ;;  %1189 = vmatprep.subr.bf16.mxu1 %v1722_v15 }
  0x83   :  { %1201 = vmatpush1.bf16.msra.mxu0 %v1633_v2  ;;  %1480 = vmatprep.mubr.msk.bf16.mxu0 %vm1802_vm2, %v1797_v17  ;;  %v1645_v17 = vld [vmem:[%s2328_s1 + $0xc0] ss:$40 sps:$4 sm:$0xff]  }
  0x84   :  { %1202 = vmatprep.subr.bf16.mxu0 %v1641_v3 }
  0x85   :  { %1190 = vmatpush1.bf16.msra.mxu1 %v1720_v20 }
  0x87   :  { %1203 = vmatpush1.bf16.msra.mxu0 %v1639_v6 }
  0x88   :  { %1204 = vmatprep.subr.bf16.mxu0 %v1647_v7  ;;  %1475 = vmatmul.mubr.msk.bf16.vlgmr.msra.gmra.mrb[4].mxu1 %vm1937_vm5, %v1932_v60 }
  0x8b   :  { %1205 = vmatpush1.bf16.msra.mxu0 %v1645_v17  ;;  %v208_v17 = vsub.s32 5, %v2274_v43 }
  0x8c   :  { %1206 = vmatprep.subr.bf16.mxu0 %v1653_v19  ;;  %v205_v19 = vrot.slane %v182_v45, %v204_v9 }
  0x8d   :  { %v209_v10 = vrot.slane %v182_v45, %v208_v17 }
  0x8f   :  { %1207 = vmatpush1.bf16.msra.mxu0 %v1651_v12 }
  0x90   :  { %1208 = vmatprep.subr.bf16.mxu0 %v1659_v13 }
  0x93   :  { %1209 = vmatpush1.bf16.msra.mxu0 %v1657_v16 }
  0x94   :  { %1210 = vmatprep.subr.bf16.mxu0 %v1665_v18 }
  0x97   :  { %1211 = vmatpush1.bf16.msra.mxu0 %v1663_v21 }
  0x98   :  { %1212 = vmatprep.subr.bf16.mxu0 %v1671_v22 }
  0x9b   :  { %1213 = vmatpush1.bf16.msra.mxu0 %v1669_v23  ;;  %v212_v23 = vsub.s32 6, %v2274_v43 }
  0x9c   :  { %1214 = vmatprep.subr.bf16.mxu0 %v1677_v24  ;;  %v216_v24 = vsub.s32 7, %v2274_v43 }
  0x9f   :  { %1215 = vmatpush1.bf16.msra.mxu0 %v1675_v25  ;;  %v213_v25 = vrot.slane %v182_v45, %v212_v23 }
  0xa0   :  { %1216 = vmatprep.subr.bf16.mxu0 %v1683_v26  ;;  %v217_v26 = vrot.slane %v182_v45, %v216_v24 }
  0xa3   :  { %1217 = vmatpush1.bf16.msra.mxu0 %v1681_v27 }
  0xa4   :  { %1218 = vmatprep.subr.bf16.mxu0 %v1689_v28 }
  0xa7   :  { %1219 = vmatpush1.bf16.msra.mxu0 %v1687_v29 }
  0xa8   :  { %1220 = vmatprep.subr.bf16.mxu0 %v1695_v30 }
  0xab   :  { %1221 = vmatpush1.bf16.msra.mxu0 %v1693_v31 }
  0xac   :  { %1222 = vmatprep.subr.bf16.mxu0 %v1701_v32 }
  0xaf   :  { %1223 = vmatpush1.bf16.msra.mxu0 %v1699_v33 }
  0xb0   :  { %1224 = vmatprep.subr.bf16.mxu0 %v1707_v34 }
  0xb3   :  { %1225 = vmatpush1.bf16.msra.mxu0 %v1705_v35 }
  0xb4   :  { %1226 = vmatprep.subr.bf16.mxu0 %v1713_v36 }
  0xb7   :  { %1227 = vmatpush1.bf16.msra.mxu0 %v1711_v37  ;;  %v183_v37 = vld [vmem:[%s2330_s2 + $0x8] sm:$0x3] }
  0xb8   :  { %1228 = vmatprep.subr.bf16.mxu0 %v1719_v38  ;;  %v221_v38 = vrot.slane %v183_v37, %v188_v44 }
  0xbb   :  { %1229 = vmatpush1.bf16.msra.mxu0 %v1717_v39  ;;  %v225_v39 = vrot.slane %v183_v37, %v192_v46 }
  0xbc   :  { %1230 = vmatprep.subr.bf16.mxu0 %v1725_v40 }
  0xbf   :  { %1231 = vmatpush1.bf16.msra.mxu0 %v1723_v41 }
  0xc2   :  { %1485 = vmatmul.mubr.msk.bf16.vlgmr.msra.gmra.mrb[8].mxu0 %vm1937_vm5, %v1932_v60 }
 0x115   :  { %v1070_v49 = vpop.f32.mrb[0].mxu0 }
 0x116   :  { %v1071_v62 = vadd.f32 %v1070_v49, %v189_v47  ;;  %v1072_v60 = vpop.f32.mrb[1].mxu0 }
 0x117   :  { %v1073_v50 = vadd.f32 %v1072_v60, %v193_v48  ;;  %v1074_v51 = vpop.f32.mrb[2].mxu0 }
 0x118   :  { %v1241_v52 = vmax.f32 %v1071_v62, 0.0  ;;  %v1075_v53 = vpop.f32.mrb[3].mxu0 }
 0x119   :  { %v1242_v54 = vmax.f32 %v1073_v50, 0.0 }
 0x11a   :  { %v1251_v55 = vmin.f32 %v1241_v52, 6.0 }
 0x11b   :  { %v1252_v56 = vmin.f32 %v1242_v54, 6.0  ;;  %v1111_v63 = vpop.f32.mrb[0].mxu1 }
 0x11c   :  { %1261 = vst [vmem:[%s2331_s3] sm:$0xff] %v1251_v55  ;;  %v1112_v0 = vadd.f32 %v1111_v63, %v197_v59  ;;  %v1113_v1 = vpop.f32.mrb[1].mxu1 }
 0x11d   :  { %1262 = vst [vmem:[%s2331_s3 + $0x8] sm:$0xff] %v1252_v56  ;;  %v1114_v2 = vadd.f32 %v1113_v1, %v201_v61  ;;  %v1115_v3 = vpop.f32.mrb[2].mxu1 }
 0x11e   :  { %v1243_v4 = vmax.f32 %v1112_v0, 0.0  ;;  %v1116_v5 = vpop.f32.mrb[3].mxu1 }
 0x11f   :  { %v1244_v6 = vmax.f32 %v1114_v2, 0.0 }
 0x120   :  { %v1253_v7 = vmin.f32 %v1243_v4, 6.0 }
 0x121   :  { %v1254_v8 = vmin.f32 %v1244_v6, 6.0 }
 0x122   :  { %1263 = vst [vmem:[%s2331_s3 + $0x10] sm:$0xff] %v1253_v7 }
 0x123   :  { %1264 = vst [vmem:[%s2331_s3 + $0x18] sm:$0xff] %v1254_v8 }
 0x155   :  { %v1152_v11 = vpop.f32.mrb[4].mxu0 }
 0x156   :  { %v1153_v12 = vadd.f32 %v1152_v11, %v205_v19  ;;  %v1154_v13 = vpop.f32.mrb[5].mxu0 }
 0x157   :  { %v1155_v14 = vadd.f32 %v1154_v13, %v209_v10  ;;  %v1156_v15 = vpop.f32.mrb[6].mxu0 }
 0x158   :  { %v1245_v16 = vmax.f32 %v1153_v12, 0.0  ;;  %v1157_v18 = vpop.f32.mrb[7].mxu0 }
 0x159   :  { %v1246_v20 = vmax.f32 %v1155_v14, 0.0 }
 0x15a   :  { %v1255_v21 = vmin.f32 %v1245_v16, 6.0 }
 0x15b   :  { %v1256_v22 = vmin.f32 %v1246_v20, 6.0  ;;  %v1193_v27 = vpop.f32.mrb[4].mxu1 }
 0x15c   :  { %1265 = vst [vmem:[%s2331_s3 + $0x20] sm:$0xff] %v1255_v21  ;;  %v1194_v28 = vadd.f32 %v1193_v27, %v213_v25  ;;  %v1195_v29 = vpop.f32.mrb[5].mxu1 }
 0x15d   :  { %1266 = vst [vmem:[%s2331_s3 + $0x28] sm:$0xff] %v1256_v22  ;;  %v1196_v30 = vadd.f32 %v1195_v29, %v217_v26  ;;  %v1197_v31 = vpop.f32.mrb[6].mxu1 }
 0x15e   :  { %v1247_v32 = vmax.f32 %v1194_v28, 0.0  ;;  %v1198_v33 = vpop.f32.mrb[7].mxu1 }
 0x15f   :  { %v1248_v34 = vmax.f32 %v1196_v30, 0.0 }
 0x160   :  { %v1257_v35 = vmin.f32 %v1247_v32, 6.0 }
 0x161   :  { %v1258_v36 = vmin.f32 %v1248_v34, 6.0 }
 0x162   :  { %1267 = vst [vmem:[%s2331_s3 + $0x30] sm:$0xff] %v1257_v35 }
 0x163   :  { %1268 = vst [vmem:[%s2331_s3 + $0x38] sm:$0xff] %v1258_v36 }
 0x195   :  { %v1234_v40 = vpop.f32.mrb[8].mxu0 }
 0x196   :  { %v1235_v41 = vadd.f32 %v1234_v40, %v221_v38  ;;  %v1236_v42 = vpop.f32.mrb[9].mxu0 }
 0x197   :  { %v1237_v45 = vadd.f32 %v1236_v42, %v225_v39  ;;  %v1238_v47 = vpop.f32.mrb[10].mxu0 }
 0x198   :  { %v1249_v48 = vmax.f32 %v1235_v41, 0.0  ;;  %v1239_v49 = vpop.f32.mrb[11].mxu0 }
 0x199   :  { %v1250_v62 = vmax.f32 %v1237_v45, 0.0 }
 0x19a   :  { %v1259_v60 = vmin.f32 %v1249_v48, 6.0 }
 0x19b   :  { %v1260_v50 = vmin.f32 %v1250_v62, 6.0 }
 0x19c   :  { %1269 = vst [vmem:[%s2331_s3 + $0x40] sm:$0xff] %v1259_v60 }
 0x19d   :  { %1271 = vst.msk [vmem:[%s2331_s3 + $0x48] sm:$0xff] %vm1270_vm6, %v1260_v50 }

// kernel: forward_dense.6
= control target key start
LH: loop header
LB: loop body
LE: loop exit
PB: predicated region body
PF: predicated region fallthrough
CT: control target
= control target key end

     0   :  { %vm491_vm0 = vcmask 1042432   ;;  %vm487_vm1 = vcmask 310272   ;;  %vm679_vm2 = vcmask 130048   ;;  %s1157_s1 = inlined_call_operand.vmem [shape: bf16[294,400], index: 1, kind: input, shape index: {}]   ;;  %s1158_s0 = inlined_call_operand.vmem [shape: f32[8,294], index: 0, kind: input, shape index: {}]   ;;  %s1159_s2 = inlined_call_operand.vmem [shape: f32[1,400], index: 2, kind: input, shape index: {}]   ;;  %s1160_s3 = inlined_call_operand.vmem [shape: f32[8,400], index: 3, kind: output, shape index: {}]  }
   0x1   :  { %v778_v0 = vld [vmem:[%s1157_s1 + $0x4] ss:$16 sps:$4 sm:$0xff]   ;;  %v780_v1 = vld [vmem:[%s1157_s1 + $0xc] ss:$16 sps:$4 sm:$0xff]   ;;  %v782_v2 = vld [vmem:[%s1157_s1] ss:$16 sps:$4 sm:$0xff]  }
   0x2   :  { %504 = vmatprep.subr.bf16.mxu0 %v778_v0  ;;  %v783_v3 = vld [vmem:[%s1157_s1 + $0x8] ss:$16 sps:$4 sm:$0xff]   ;;  %586 = vmatprep.subr.bf16.mxu1 %v780_v1  ;;  %v784_v4 = vld [vmem:[%s1157_s1 + $0x24] ss:$16 sps:$4 sm:$0xff]   ;;  %v786_v5 = vld [vmem:[%s1157_s1 + $0x2c] ss:$16 sps:$4 sm:$0xff]  }
   0x3   :  { %505 = vmatpush1.bf16.msra.mxu0 %v782_v2  ;;  %587 = vmatpush1.bf16.msra.mxu1 %v783_v3  ;;  %v788_v6 = vld [vmem:[%s1157_s1 + $0x20] ss:$16 sps:$4 sm:$0xff]   ;;  %v789_v7 = vld [vmem:[%s1157_s1 + $0x28] ss:$16 sps:$4 sm:$0xff]   ;;  %v790_v8 = vld [vmem:[%s1157_s1 + $0x44] ss:$16 sps:$4 sm:$0xff]  }
   0x4   :  { %506 = vmatprep.subr.bf16.mxu0 %v784_v4  ;;  %588 = vmatprep.subr.bf16.mxu1 %v786_v5  ;;  %v792_v9 = vld [vmem:[%s1157_s1 + $0x4c] ss:$16 sps:$4 sm:$0xff]   ;;  %v794_v10 = vld [vmem:[%s1157_s1 + $0x40] ss:$16 sps:$4 sm:$0xff]   ;;  %v795_v11 = vld [vmem:[%s1157_s1 + $0x48] ss:$16 sps:$4 sm:$0xff]  }
   0x5   :  { %v796_v12 = vld [vmem:[%s1157_s1 + $0x64] ss:$16 sps:$4 sm:$0xff]   ;;  %v798_v13 = vld [vmem:[%s1157_s1 + $0x6c] ss:$16 sps:$4 sm:$0xff]   ;;  %v800_v14 = vld [vmem:[%s1157_s1 + $0x60] ss:$16 sps:$4 sm:$0xff]  }
   0x6   :  { %v801_v15 = vld [vmem:[%s1157_s1 + $0x68] ss:$16 sps:$4 sm:$0xff]   ;;  %v802_v16 = vld [vmem:[%s1157_s1 + $0x84] ss:$16 sps:$4 sm:$0xff]   ;;  %v804_v17 = vld [vmem:[%s1157_s1 + $0x8c] ss:$16 sps:$4 sm:$0xff]  }
   0x7   :  { %507 = vmatpush1.bf16.msra.mxu0 %v788_v6  ;;  %589 = vmatpush1.bf16.msra.mxu1 %v789_v7  ;;  %v806_v18 = vld [vmem:[%s1157_s1 + $0x80] ss:$16 sps:$4 sm:$0xff]   ;;  %v807_v19 = vld [vmem:[%s1157_s1 + $0x88] ss:$16 sps:$4 sm:$0xff]   ;;  %v808_v20 = vld [vmem:[%s1157_s1 + $0xa4] ss:$16 sps:$4 sm:$0xff]  }
   0x8   :  { %508 = vmatprep.subr.bf16.mxu0 %v790_v8  ;;  %590 = vmatprep.subr.bf16.mxu1 %v792_v9  ;;  %v810_v21 = vld [vmem:[%s1157_s1 + $0xac] ss:$16 sps:$4 sm:$0xff]   ;;  %v812_v22 = vld [vmem:[%s1157_s1 + $0xa0] ss:$16 sps:$4 sm:$0xff]   ;;  %v813_v23 = vld [vmem:[%s1157_s1 + $0xa8] ss:$16 sps:$4 sm:$0xff]  }
   0x9   :  { %v814_v24 = vld [vmem:[%s1157_s1 + $0xc4] ss:$16 sps:$4 sm:$0xff]   ;;  %v816_v25 = vld [vmem:[%s1157_s1 + $0xcc] ss:$16 sps:$4 sm:$0xff]   ;;  %v818_v26 = vld [vmem:[%s1157_s1 + $0xc0] ss:$16 sps:$4 sm:$0xff]  }
   0xa   :  { %v819_v27 = vld [vmem:[%s1157_s1 + $0xc8] ss:$16 sps:$4 sm:$0xff]   ;;  %v820_v28 = vld [vmem:[%s1157_s1 + $0xe4] ss:$16 sps:$4 sm:$0xff]   ;;  %v822_v29 = vld [vmem:[%s1157_s1 + $0xec] ss:$16 sps:$4 sm:$0xff]  }
   0xb   :  { %509 = vmatpush1.bf16.msra.mxu0 %v794_v10  ;;  %591 = vmatpush1.bf16.msra.mxu1 %v795_v11  ;;  %v824_v30 = vld [vmem:[%s1157_s1 + $0xe0] ss:$16 sps:$4 sm:$0xff]   ;;  %v825_v31 = vld [vmem:[%s1157_s1 + $0xe8] ss:$16 sps:$4 sm:$0xff]   ;;  %v826_v32 = vld [vmem:[%s1157_s1 + $0x104] ss:$16 sps:$4 sm:$0xff]  }
   0xc   :  { %510 = vmatprep.subr.bf16.mxu0 %v796_v12  ;;  %592 = vmatprep.subr.bf16.mxu1 %v798_v13  ;;  %v828_v33 = vld [vmem:[%s1157_s1 + $0x10c] ss:$16 sps:$4 sm:$0xff]   ;;  %v830_v34 = vld [vmem:[%s1157_s1 + $0x100] ss:$16 sps:$4 sm:$0xff]   ;;  %v831_v35 = vld [vmem:[%s1157_s1 + $0x108] ss:$16 sps:$4 sm:$0xff]  }
   0xd   :  { %v832_v36 = vld [vmem:[%s1157_s1 + $0x124] ss:$16 sps:$4 sm:$0xff]   ;;  %v834_v37 = vld [vmem:[%s1157_s1 + $0x12c] ss:$16 sps:$4 sm:$0xff]   ;;  %v836_v38 = vld [vmem:[%s1157_s1 + $0x120] ss:$16 sps:$4 sm:$0xff]  }
   0xe   :  { %v837_v39 = vld [vmem:[%s1157_s1 + $0x128] ss:$16 sps:$4 sm:$0xff]   ;;  %v838_v40 = vld [vmem:[%s1157_s1 + $0x144] ss:$16 sps:$4 sm:$0xff]   ;;  %v840_v41 = vld [vmem:[%s1157_s1 + $0x14c] ss:$16 sps:$4 sm:$0xff]  }
   0xf   :  { %511 = vmatpush1.bf16.msra.mxu0 %v800_v14  ;;  %593 = vmatpush1.bf16.msra.mxu1 %v801_v15  ;;  %v842_v42 = vld [vmem:[%s1157_s1 + $0x140] ss:$16 sps:$4 sm:$0xff]   ;;  %v843_v43 = vld [vmem:[%s1157_s1 + $0x148] ss:$16 sps:$4 sm:$0xff]   ;;  %v844_v44 = vld [vmem:[%s1157_s1 + $0x164] ss:$16 sps:$4 sm:$0xff]  }
  0x10   :  { %512 = vmatprep.subr.bf16.mxu0 %v802_v16  ;;  %594 = vmatprep.subr.bf16.mxu1 %v804_v17  ;;  %v846_v45 = vld [vmem:[%s1157_s1 + $0x16c] ss:$16 sps:$4 sm:$0xff]   ;;  %v848_v47 = vld [vmem:[%s1157_s1 + $0x160] ss:$16 sps:$4 sm:$0xff]   ;;  %v849_v49 = vld [vmem:[%s1157_s1 + $0x168] ss:$16 sps:$4 sm:$0xff]  }
  0x11   :  { %v16_v46 = vld [vmem:[%s1158_s0 + $0x8] sm:$0xff]  ;;  %v850_v50 = vld [vmem:[%s1157_s1 + $0x184] ss:$16 sps:$4 sm:$0xff]   ;;  %v854_v52 = vld [vmem:[%s1157_s1 + $0x180] ss:$16 sps:$4 sm:$0xff]  }
  0x12   :  { %v19_v48 = vpack.c.bf16 %v16_v46, %v16_v46  ;;  %v852_v51 = vld [vmem:[%s1157_s1 + $0x18c] ss:$16 sps:$4 sm:$0xff]   ;;  %v855_v53 = vld [vmem:[%s1157_s1 + $0x188] ss:$16 sps:$4 sm:$0xff]   ;;  %v856_v54 = vld [vmem:[%s1157_s1 + $0x1a4] ss:$16 sps:$4 sm:$0xff]  }
  0x13   :  { %513 = vmatpush1.bf16.msra.mxu0 %v806_v18  ;;  %595 = vmatpush1.bf16.msra.mxu1 %v807_v19  ;;  %v858_v55 = vld [vmem:[%s1157_s1 + $0x1ac] ss:$16 sps:$4 sm:$0xff]   ;;  %v860_v56 = vld [vmem:[%s1157_s1 + $0x1a0] ss:$16 sps:$4 sm:$0xff]   ;;  %v861_v57 = vld [vmem:[%s1157_s1 + $0x1a8] ss:$16 sps:$4 sm:$0xff]  }
  0x14   :  { %514 = vmatprep.subr.bf16.mxu0 %v808_v20  ;;  %596 = vmatprep.subr.bf16.mxu1 %v810_v21  ;;  %v862_v58 = vld [vmem:[%s1157_s1 + $0x1c4] ss:$16 sps:$4 sm:$0xff]   ;;  %v864_v59 = vld [vmem:[%s1157_s1 + $0x1cc] ss:$16 sps:$4 sm:$0xff]   ;;  %v866_v60 = vld [vmem:[%s1157_s1 + $0x1c0] ss:$16 sps:$4 sm:$0xff]  }
  0x15   :  { %536 = vmatprep.mubr.bf16.mxu0 %v19_v48  ;;  %618 = vmatprep.mubr.bf16.mxu1 %v19_v48  ;;  %v867_v61 = vld [vmem:[%s1157_s1 + $0x1c8] ss:$16 sps:$4 sm:$0xff]   ;;  %v868_v62 = vld [vmem:[%s1157_s1 + $0x1e4] ss:$16 sps:$4 sm:$0xff]   ;;  %v870_v63 = vld [vmem:[%s1157_s1 + $0x1ec] ss:$16 sps:$4 sm:$0xff]  }
  0x16   :  { %v872_v0 = vld [vmem:[%s1157_s1 + $0x1e0] ss:$16 sps:$4 sm:$0xff]   ;;  %v873_v1 = vld [vmem:[%s1157_s1 + $0x1e8] ss:$16 sps:$4 sm:$0xff]   ;;  %v876_v3 = vld [vmem:[%s1157_s1 + $0x204] ss:$16 sps:$4 sm:$0xff]  }
  0x17   :  { %515 = vmatpush1.bf16.msra.mxu0 %v812_v22  ;;  %597 = vmatpush1.bf16.msra.mxu1 %v813_v23  ;;  %v15_v2 = vld [vmem:[%s1158_s0] sm:$0xff]  ;;  %v879_v4 = vld [vmem:[%s1157_s1 + $0x20c] ss:$16 sps:$4 sm:$0xff]   ;;  %v877_v7 = vld [vmem:[%s1157_s1 + $0x208] ss:$16 sps:$4 sm:$0xff]   ;;  %v890_v18 = vmov 0   ;;  %v97_v23 = vlaneseq }
  0x18   :  { %516 = vmatprep.subr.bf16.mxu0 %v814_v24  ;;  %598 = vmatprep.subr.bf16.mxu1 %v816_v25  ;;  %v18_v5 = vpack.c.bf16 %v15_v2, %v15_v2  ;;  %v874_v6 = vld [vmem:[%s1157_s1 + $0x200] ss:$16 sps:$4 sm:$0xff]   ;;  %v882_v8 = vld [vmem:[%s1157_s1 + $0x224] ss:$16 sps:$4 sm:$0xff]   ;;  %v885_v9 = vld [vmem:[%s1157_s1 + $0x22c] ss:$16 sps:$4 sm:$0xff]  }
  0x19   :  { %v93_v10 = vld [vmem:[%s1157_s1 + $0x240] sm:$0x77]  ;;  %v94_v11 = vld [vmem:[%s1157_s1 + $0x248] sm:$0x77]  ;;  %v17_v19 = vld [vmem:[%s1158_s0 + $0x10] sm:$0xff]  ;;  %v98_v24 = vshrl.u32 %v97_v23, 7 }
  0x1a   :  { %v880_v12 = vld [vmem:[%s1157_s1 + $0x220] ss:$16 sps:$4 sm:$0xff]   ;;  %v883_v13 = vld [vmem:[%s1157_s1 + $0x228] ss:$16 sps:$4 sm:$0xff]   ;;  %v758_v14 = vcombine.high %v93_v10, %v93_v10  ;;  %v760_v15 = vcombine.high %v94_v11, %v94_v11  ;;  %v757_v16 = vcombine.low %v93_v10, %v93_v10  ;;  %v759_v17 = vcombine.low %v94_v11, %v94_v11 }
  0x1b   :  { %517 = vmatpush1.bf16.msra.mxu0 %v818_v26  ;;  %599 = vmatpush1.bf16.msra.mxu1 %v819_v27  ;;  %v20_v22 = vpack.c.bf16 %v17_v19, %v17_v19  ;;  %v99_v25 = vsub.s32 0, %v98_v24  ;;  %v107_v26 = vsub.s32 2, %v98_v24  ;;  %v95_v27 = vld [vmem:[%s1159_s2] sm:$0xf] }
  0x1c   :  { %518 = vmatprep.subr.bf16.mxu0 %v820_v28  ;;  %600 = vmatprep.subr.bf16.mxu1 %v822_v29  ;;  %v493_v20 = vsel %vm491_vm0, %v757_v16, 0  ;;  %v499_v21 = vsel %vm491_vm0, %v759_v17, 0  ;;  %v103_v28 = vsub.s32 1, %v98_v24  ;;  %v111_v29 = vsub.s32 3, %v98_v24 }
  0x1f   :  { %519 = vmatpush1.bf16.msra.mxu0 %v824_v30  ;;  %601 = vmatpush1.bf16.msra.mxu1 %v825_v31  ;;  %v100_v30 = vrot.slane %v95_v27, %v99_v25  ;;  %v108_v31 = vrot.slane %v95_v27, %v107_v26 }
  0x20   :  { %520 = vmatprep.subr.bf16.mxu0 %v826_v32  ;;  %602 = vmatprep.subr.bf16.mxu1 %v828_v33  ;;  %v104_v32 = vrot.slane %v95_v27, %v103_v28  ;;  %v112_v33 = vrot.slane %v95_v27, %v111_v29 }
  0x23   :  { %521 = vmatpush1.bf16.msra.mxu0 %v830_v34  ;;  %603 = vmatpush1.bf16.msra.mxu1 %v831_v35 }
  0x24   :  { %522 = vmatprep.subr.bf16.mxu0 %v832_v36  ;;  %604 = vmatprep.subr.bf16.mxu1 %v834_v37 }
  0x27   :  { %523 = vmatpush1.bf16.msra.mxu0 %v836_v38  ;;  %605 = vmatpush1.bf16.msra.mxu1 %v837_v39 }
  0x28   :  { %524 = vmatprep.subr.bf16.mxu0 %v838_v40  ;;  %606 = vmatprep.subr.bf16.mxu1 %v840_v41 }
  0x2b   :  { %525 = vmatpush1.bf16.msra.mxu0 %v842_v42  ;;  %607 = vmatpush1.bf16.msra.mxu1 %v843_v43 }
  0x2c   :  { %526 = vmatprep.subr.bf16.mxu0 %v844_v44  ;;  %608 = vmatprep.subr.bf16.mxu1 %v846_v45 }
  0x2f   :  { %527 = vmatpush1.bf16.msra.mxu0 %v848_v47  ;;  %609 = vmatpush1.bf16.msra.mxu1 %v849_v49 }
  0x30   :  { %528 = vmatprep.subr.bf16.mxu0 %v850_v50  ;;  %610 = vmatprep.subr.bf16.mxu1 %v852_v51 }
  0x33   :  { %529 = vmatpush1.bf16.msra.mxu0 %v854_v52  ;;  %611 = vmatpush1.bf16.msra.mxu1 %v855_v53 }
  0x34   :  { %530 = vmatprep.subr.bf16.mxu0 %v856_v54  ;;  %612 = vmatprep.subr.bf16.mxu1 %v858_v55 }
  0x37   :  { %531 = vmatpush1.bf16.msra.mxu0 %v860_v56  ;;  %613 = vmatpush1.bf16.msra.mxu1 %v861_v57 }
  0x38   :  { %532 = vmatprep.subr.bf16.mxu0 %v862_v58  ;;  %614 = vmatprep.subr.bf16.mxu1 %v864_v59 }
  0x3b   :  { %533 = vmatpush1.bf16.msra.mxu0 %v866_v60  ;;  %615 = vmatpush1.bf16.msra.mxu1 %v867_v61 }
  0x3c   :  { %534 = vmatprep.subr.bf16.mxu0 %v868_v62  ;;  %616 = vmatprep.subr.bf16.mxu1 %v870_v63 }
  0x3f   :  { %535 = vmatpush1.bf16.msra.mxu0 %v872_v0  ;;  %617 = vmatpush1.bf16.msra.mxu1 %v873_v1 }
  0x40   :  { %545 = vmatprep.subr.bf16.mxu0 %v876_v3  ;;  %627 = vmatprep.subr.bf16.mxu1 %v879_v4 }
  0x42   :  { %537 = vmatmul.mubr.bf16.vlgmr.msra.gmra.mrb[0].mxu0 %v18_v5  ;;  %619 = vmatmul.mubr.bf16.vlgmr.msra.gmra.mrb[0].mxu1 %v18_v5 }
  0x43   :  { %546 = vmatpush1.bf16.msra.mxu0 %v874_v6  ;;  %628 = vmatpush1.bf16.msra.mxu1 %v877_v7 }
  0x44   :  { %547 = vmatprep.subr.bf16.mxu0 %v882_v8  ;;  %629 = vmatprep.subr.bf16.mxu1 %v885_v9 }
  0x45   :  { %577 = vmatprep.mubr.bf16.mxu0 %v890_v18  ;;  %659 = vmatprep.mubr.bf16.mxu1 %v890_v18 }
  0x47   :  { %548 = vmatpush1.bf16.msra.mxu0 %v880_v12  ;;  %630 = vmatpush1.bf16.msra.mxu1 %v883_v13 }
  0x48   :  { %761 = vmatprep.subr.msk.bf16.mxu0 %vm491_vm0, %v758_v14  ;;  %763 = vmatprep.subr.msk.bf16.mxu1 %vm491_vm0, %v760_v15 }
  0x4b   :  { %550 = vmatpush1.bf16.msra.mxu0 %v493_v20  ;;  %632 = vmatpush1.bf16.msra.mxu1 %v499_v21 }
  0x4e   :  { %762 = vmatmul.mubr.msk.bf16.vlgmr.msra.gmra.mrb[0].mxu0 %vm487_vm1, %v20_v22  ;;  %764 = vmatmul.mubr.msk.bf16.vlgmr.msra.gmra.mrb[0].mxu1 %vm487_vm1, %v20_v22 }
 0x121   :  { %v579_v34 = vpop.f32.mrb[0].mxu0  ;;  %v661_v35 = vpop.f32.mrb[0].mxu1 }
 0x122   :  { %v765_v36 = vadd.f32 %v579_v34, %v100_v30  ;;  %v767_v37 = vadd.f32 %v661_v35, %v108_v31  ;;  %v581_v38 = vpop.f32.mrb[1].mxu0  ;;  %v663_v39 = vpop.f32.mrb[1].mxu1 }
 0x123   :  { %v766_v40 = vadd.f32 %v581_v38, %v104_v32  ;;  %v768_v41 = vadd.f32 %v663_v39, %v112_v33  ;;  %v583_v42 = vpop.f32.mrb[2].mxu0  ;;  %v665_v43 = vpop.f32.mrb[2].mxu1 }
 0x124   :  { %v668_v44 = vmax.f32 %v765_v36, 0.0  ;;  %v670_v45 = vmax.f32 %v767_v37, 0.0  ;;  %v584_v46 = vpop.f32.mrb[3].mxu0  ;;  %v666_v47 = vpop.f32.mrb[3].mxu1 }
 0x125   :  { %v669_v48 = vmax.f32 %v766_v40, 0.0  ;;  %v671_v49 = vmax.f32 %v768_v41, 0.0 }
 0x126   :  { %v672_v50 = vmin.f32 %v668_v44, 6.0  ;;  %v674_v51 = vmin.f32 %v670_v45, 6.0 }
 0x127   :  { %v673_v52 = vmin.f32 %v669_v48, 6.0  ;;  %v675_v53 = vmin.f32 %v671_v49, 6.0 }
 0x128   :  { %676 = vst [vmem:[%s1160_s3] sm:$0xff] %v672_v50  ;;  %678 = vst [vmem:[%s1160_s3 + $0x10] sm:$0xff] %v674_v51 }
 0x129   :  { %677 = vst [vmem:[%s1160_s3 + $0x8] sm:$0xff] %v673_v52  ;;  %680 = vst.msk [vmem:[%s1160_s3 + $0x18] sm:$0xff] %vm679_vm2, %v675_v53 }

// kernel: forward_dense.7
= control target key start
LH: loop header
LB: loop body
LE: loop exit
PB: predicated region body
PF: predicated region fallthrough
CT: control target
= control target key end

     0   :  { %v218_v0 = vmov 0.0   ;;  %vm219_vm0 = vmmov 0   ;;  %vm61_vm1 = vcmask 523264   ;;  %vm124_vm2 = vcmask 261120   ;;  %s272_s1 = inlined_call_operand.vmem [shape: bf16[64,32], index: 1, kind: input, shape index: {}]   ;;  %s273_s0 = inlined_call_operand.vmem [shape: f32[8,64], index: 0, kind: input, shape index: {}]   ;;  %s274_s3 = inlined_call_operand.vmem [shape: bf16[32,128], index: 3, kind: input, shape index: {}]   ;;  %s275_s2 = inlined_call_operand.vmem [shape: f32[1,32], index: 2, kind: input, shape index: {}]   ;;  %s276_s4 = inlined_call_operand.vmem [shape: f32[8,128], index: 4, kind: output, shape index: {}]  }
   0x1   :  { %190 = vmatprep.subr.bf16.mxu0 %v218_v0  ;;  %v212_v1 = vld [vmem:[%s272_s1] sm:$0xff]   ;;  %198 = vmatprep.mubr.msk.bf16.mxu0 %vm219_vm0, %v218_v0  ;;  %v213_v2 = vld [vmem:[%s272_s1 + $0x8] sm:$0xff]   ;;  %v214_v5 = vld [vmem:[%s272_s1 + $0x10] sm:$0xff]  }
   0x2   :  { %202 = vmatprep.subr.bf16.mxu1 %v218_v0  ;;  %206 = vmatprep.mubr.msk.bf16.mxu1 %vm219_vm0, %v218_v0  ;;  %v18_v3 = vld [vmem:[%s273_s0] sm:$0xff]  ;;  %v215_v7 = vld [vmem:[%s272_s1 + $0x18] sm:$0xff]   ;;  %v217_v10 = vld [vmem:[%s274_s3 + $0x8] sm:$0xff]  }
   0x3   :  { %191 = vmatpush3.bf16.msra.mxu0 %v212_v1  ;;  %v19_v4 = vmax.f32 %v18_v3, 0.0  ;;  %v216_v9 = vld [vmem:[%s274_s3] sm:$0xff]  }
   0x4   :  { %192 = vmatprep.subr.bf16.mxu0 %v218_v0  ;;  %203 = vmatpush3.bf16.msra.mxu1 %v216_v9  ;;  %v173_v11 = vld [vmem:[%s275_s2] ss:$0 sm:$0xff] }
   0x5   :  { %v20_v6 = vmin.f32 %v19_v4, 6.0  ;;  %204 = vmatprep.subr.bf16.mxu1 %v218_v0 }
   0x7   :  { %193 = vmatpush3.bf16.msra.mxu0 %v213_v2  ;;  %v21_v8 = vpack.c.bf16 %v20_v6, %v20_v6 }
   0x8   :  { %194 = vmatprep.subr.bf16.mxu0 %v218_v0  ;;  %205 = vmatpush3.bf16.msra.mxu1 %v217_v10 }
   0xb   :  { %195 = vmatpush3.bf16.msra.mxu0 %v214_v5 }
   0xc   :  { %196 = vmatprep.subr.bf16.mxu0 %v218_v0 }
   0xf   :  { %197 = vmatpush3.bf16.msra.mxu0 %v215_v7 }
  0x12   :  { %199 = vmatmul.mubr.msk.bf16.vlgmr.msra.gmra.mrb[0].mxu0 %vm61_vm1, %v21_v8 }
  0xe5   :  { %v99_v12 = vpop.f32.mrb[0].mxu0 }
  0xe6   :  { %v100_v13 = vadd.f32 %v173_v11, %v99_v12  ;;  %v200_v14 = vpop.f32.mrb[1].mxu0 }
  0xe7   :  { %v102_v15 = vpop.f32.mrb[2].mxu0 }
  0xe8   :  { %v105_v16 = vmax.f32 %v100_v13, 0.0  ;;  %v201_v17 = vpop.f32.mrb[3].mxu0 }
  0xea   :  { %v106_v18 = vmin.f32 %v105_v16, 6.0 }
  0xec   :  { %v107_v19 = vpack.c.bf16 %v106_v18, %v106_v18 }
  0xee   :  { %207 = vmatmul.mubr.msk.bf16.vlgmr.msra.gmra.mrb[0].mxu1 %vm124_vm2, %v107_v19 }
 0x1c1   :  { %v162_v20 = vpop.f32.mrb[0].mxu1 }
 0x1c2   :  { %168 = vst [vmem:[%s276_s4] sm:$0xff] %v162_v20  ;;  %v208_v21 = vpop.f32.mrb[1].mxu1 }
 0x1c3   :  { %v165_v22 = vpop.f32.mrb[2].mxu1 }
 0x1c4   :  { %v209_v23 = vpop.f32.mrb[3].mxu1 }

// kernel: forward_dense.8
= control target key start
LH: loop header
LB: loop body
LE: loop exit
PB: predicated region body
PF: predicated region fallthrough
CT: control target
= control target key end

     0   :  { %vm12_vm0 = vcmask 261120   ;;  %v548_v0 = vmov 0.0   ;;  %vm549_vm1 = vmmov 0   ;;  %s550_s15 = smov 64   ;;  %s551_s16 = smov 32   ;;  %s676_s1 = inlined_call_operand.vmem [shape: bf16[32,128], index: 1, kind: input, shape index: {}]   ;;  %s677_s0 = inlined_call_operand.vmem [shape: f32[4,8,128], index: 0, kind: input, shape index: {}]   ;;  %s678_s2 = inlined_call_operand.vmem [shape: f32[4,8,32], index: 2, kind: output, shape index: {}]  }
   0x1   :  { %471 = vmatprep.subr.bf16.mxu0 %v548_v0  ;;  %v508_v1 = vld [vmem:[%s676_s1] sm:$0xff]   ;;  %475 = vmatprep.mubr.msk.bf16.mxu0 %vm549_vm1, %v548_v0  ;;  %13 = vst.msk [vmem:[#allocation2] sm:$0xff] %vm12_vm0, %v548_v0  ;;  %14 = vst.msk [vmem:[#allocation3] sm:$0xff] %vm12_vm0, %v548_v0  ;;  %v509_v2 = vld [vmem:[%s676_s1 + $0x8] sm:$0xff]   ;;  %s552_s17 = smov 96  }
   0x2   :  { %479 = vmatprep.subr.bf16.mxu1 %v548_v0  ;;  %483 = vmatprep.mubr.msk.bf16.mxu1 %vm549_vm1, %v548_v0  ;;  %v15_v5 = vld [vmem:[%s677_s0] sm:$0xff]  ;;  %v511_v25 = vld [vmem:[%s676_s1 + $0x8] sm:$0xff]   ;;  %v447_v60 = vld [vmem:[%s677_s0 + $0x10] sm:$0xff] }
   0x3   :  { %472 = vmatpush3.bf16.msra.mxu0 %v508_v1  ;;  %v510_v24 = vld [vmem:[%s676_s1] sm:$0xff]   ;;  %v441_v33 = vld [vmem:[%s677_s0 + $0x8] sm:$0xff] }
   0x4   :  { %473 = vmatprep.subr.bf16.mxu0 %v548_v0  ;;  %480 = vmatpush3.bf16.msra.mxu1 %v510_v24  ;;  %v512_v51 = vld [vmem:[%s676_s1] sm:$0xff]   ;;  %v513_v52 = vld [vmem:[%s676_s1 + $0x8] sm:$0xff]  }
   0x5   :  { %481 = vmatprep.subr.bf16.mxu1 %v548_v0 }
   0x7   :  { %474 = vmatpush3.bf16.msra.mxu0 %v509_v2 }
   0x8   :  { %v16_v3 = vld [vmem:[#allocation2] sm:$0xff]  ;;  %487 = vmatprep.subr.bf16.mxu0 %v548_v0  ;;  %v85_v12 = vld [vmem:[#allocation3] sm:$0xff]  ;;  %482 = vmatpush3.bf16.msra.mxu1 %v511_v25 }
   0x9   :  { %v17_v4 = vpack.c.bf16 %v16_v3, %v16_v3  ;;  %495 = vmatprep.subr.bf16.mxu1 %v548_v0 }
   0xb   :  { %476 = vmatmul.mubr.msk.bf16.vlgmr.msra.gmra.mrb[0].mxu0 %vm12_vm0, %v17_v4 }
   0xc   :  { %491 = vmatprep.mubr.msk.bf16.mxu0 %vm549_vm1, %v548_v0  ;;  %488 = vmatpush3.bf16.msra.mxu0 %v512_v51 }
   0xd   :  { %489 = vmatprep.subr.bf16.mxu0 %v548_v0 }
  0x10   :  { %490 = vmatpush3.bf16.msra.mxu0 %v513_v52 }
  0xde   :  { %v71_v6 = vpop.f32.mrb[0].mxu0 }
  0xdf   :  { %v77_v7 = vadd.f32 %v71_v6, %v15_v5  ;;  %v477_v8 = vpop.f32.mrb[1].mxu0 }
  0xe0   :  { %v74_v9 = vpop.f32.mrb[2].mxu0 }
  0xe1   :  { %516 = vtanh.f32 %v77_v7  ;;  %v478_v10 = vpop.f32.mrb[3].mxu0  ;;  %v440_v13 = vmul.f32 -1.442695, %v77_v7 }
  0xe3   :  { %518 = vpow2.f32 %v440_v13 }
  0xeb   :  { %v517_v11 = vpop.eup %516 }
  0xec   :  { %92 = vrot.lane.b32.xlu0 %v517_v11, %s550_s15 }
  0xed   :  { %v519_v14 = vpop.eup %518 }
  0xee   :  { %v81_v15 = vadd.f32 1.0, %v519_v14 }
  0xf0   :  { %87 = vrot.lane.b32.xlu0 %v85_v12, %s551_s16  ;;  %520 = vrcp.f32 %v81_v15  ;;  %v514_v15 = vld [vmem:[%s676_s1] sm:$0xff]  }
  0xfa   :  { %v521_v16 = vpop.eup %520 }
 0x15e   :  { %v93_v17 = vpop.permute.xlu0 %92 }
 0x15f   :  { %v95_v18 = vmul.f32 %v521_v16, %v93_v17 }
 0x161   :  { %97 = vrot.lane.b32.xlu1 %v95_v18, %s551_s16 }
 0x162   :  { %v88_v19 = vpop.permute.xlu0 %87 }
 0x163   :  { %v90_v20 = vmul.f32 %v521_v16, %v88_v19 }
 0x1d3   :  { %v98_v21 = vpop.permute.xlu1 %97 }
 0x1d4   :  { %v100_v22 = vadd.f32 %v98_v21, %v90_v20 }
 0x1d6   :  { %522 = vtanh.f32 %v100_v22 }
 0x1e0   :  { %v523_v23 = vpop.eup %522 }
 0x1e1   :  { %103 = vrot.lane.b32.xlu1 %v523_v23, %s550_s15  ;;  %v453_v23 = vld [vmem:[%s677_s0 + $0x18] sm:$0xff] }
 0x1e5   :  { %108 = vrot.lane.b32.xlu1 %v100_v22, %s552_s17 }
 0x253   :  { %v104_v26 = vpop.permute.xlu1 %103 }
 0x254   :  { %v106_v27 = vmul.f32 %v521_v16, %v104_v26  ;;  %v515_v16 = vld [vmem:[%s676_s1 + $0x8] sm:$0xff]  }
 0x256   :  { %113 = vrot.lane.b32.xlu0 %v106_v27, %s551_s16 }
 0x257   :  { %v109_v28 = vpop.permute.xlu1 %108 }
 0x258   :  { %111 = vst.msk [vmem:[#allocation3] sm:$0xff] %vm12_vm0, %v109_v28 }
 0x25f   :  { %v189_v29 = vld [vmem:[#allocation3] sm:$0xff] }
 0x260   :  { %191 = vrot.lane.b32.xlu1 %v189_v29, %s551_s16 }
 0x2c8   :  { %v114_v30 = vpop.permute.xlu0 %113 }
 0x2c9   :  { %116 = vst.msk [vmem:[#allocation2] sm:$0xff] %vm12_vm0, %v114_v30  ;;  %117 = vst.msk [vmem:[%s678_s2] sm:$0xff] %vm12_vm0, %v114_v30 }
 0x2d0   :  { %v120_v31 = vld [vmem:[#allocation2] sm:$0xff] }
 0x2d1   :  { %v121_v32 = vpack.c.bf16 %v120_v31, %v120_v31 }
 0x2d2   :  { %v192_v46 = vpop.permute.xlu1 %191 }
 0x2d3   :  { %484 = vmatmul.mubr.msk.bf16.vlgmr.msra.gmra.mrb[0].mxu1 %vm12_vm0, %v121_v32 }
 0x2d4   :  { %499 = vmatprep.mubr.msk.bf16.mxu1 %vm549_vm1, %v548_v0  ;;  %496 = vmatpush3.bf16.msra.mxu1 %v514_v15 }
 0x2d5   :  { %497 = vmatprep.subr.bf16.mxu1 %v548_v0 }
 0x2d8   :  { %498 = vmatpush3.bf16.msra.mxu1 %v515_v16 }
 0x3a6   :  { %v175_v34 = vpop.f32.mrb[0].mxu1 }
 0x3a7   :  { %v181_v35 = vadd.f32 %v441_v33, %v175_v34  ;;  %v485_v36 = vpop.f32.mrb[1].mxu1 }
 0x3a8   :  { %v178_v37 = vpop.f32.mrb[2].mxu1 }
 0x3a9   :  { %524 = vtanh.f32 %v181_v35  ;;  %v486_v38 = vpop.f32.mrb[3].mxu1  ;;  %v445_v40 = vmul.f32 -1.442695, %v181_v35 }
 0x3ab   :  { %526 = vpow2.f32 %v445_v40 }
 0x3b3   :  { %v525_v39 = vpop.eup %524 }
 0x3b4   :  { %196 = vrot.lane.b32.xlu0 %v525_v39, %s550_s15 }
 0x3b5   :  { %v527_v41 = vpop.eup %526 }
 0x3b6   :  { %v185_v42 = vadd.f32 1.0, %v527_v41 }
 0x3b8   :  { %528 = vrcp.f32 %v185_v42 }
 0x3c2   :  { %v529_v43 = vpop.eup %528 }
 0x3c3   :  { %v194_v47 = vmul.f32 %v529_v43, %v192_v46 }
 0x426   :  { %v197_v44 = vpop.permute.xlu0 %196 }
 0x427   :  { %v199_v45 = vmul.f32 %v529_v43, %v197_v44 }
 0x429   :  { %201 = vrot.lane.b32.xlu0 %v199_v45, %s551_s16 }
 0x49b   :  { %v202_v48 = vpop.permute.xlu0 %201 }
 0x49c   :  { %v204_v49 = vadd.f32 %v202_v48, %v194_v47 }
 0x49e   :  { %530 = vtanh.f32 %v204_v49 }
 0x4a8   :  { %v531_v50 = vpop.eup %530 }
 0x4a9   :  { %207 = vrot.lane.b32.xlu1 %v531_v50, %s550_s15 }
 0x4ad   :  { %212 = vrot.lane.b32.xlu1 %v204_v49, %s552_s17 }
 0x51b   :  { %v208_v53 = vpop.permute.xlu1 %207 }
 0x51c   :  { %v210_v54 = vmul.f32 %v529_v43, %v208_v53 }
 0x51e   :  { %217 = vrot.lane.b32.xlu0 %v210_v54, %s551_s16 }
 0x51f   :  { %v213_v55 = vpop.permute.xlu1 %212 }
 0x520   :  { %215 = vst.msk [vmem:[#allocation3] sm:$0xff] %vm12_vm0, %v213_v55 }
 0x527   :  { %v294_v56 = vld [vmem:[#allocation3] sm:$0xff] }
 0x528   :  { %296 = vrot.lane.b32.xlu1 %v294_v56, %s551_s16 }
 0x590   :  { %v218_v57 = vpop.permute.xlu0 %217 }
 0x591   :  { %220 = vst.msk [vmem:[#allocation2] sm:$0xff] %vm12_vm0, %v218_v57  ;;  %446 = vst.msk [vmem:[%s678_s2 + $0x8] sm:$0xff] %vm12_vm0, %v218_v57 }
 0x598   :  { %v225_v58 = vld [vmem:[#allocation2] sm:$0xff] }
 0x599   :  { %v226_v59 = vpack.c.bf16 %v225_v58, %v225_v58 }
 0x59a   :  { %v297_v10 = vpop.permute.xlu1 %296 }
 0x59b   :  { %492 = vmatmul.mubr.msk.bf16.vlgmr.msra.gmra.mrb[4].mxu0 %vm12_vm0, %v226_v59 }
 0x66e   :  { %v280_v61 = vpop.f32.mrb[4].mxu0 }
 0x66f   :  { %v286_v62 = vadd.f32 %v447_v60, %v280_v61  ;;  %v493_v63 = vpop.f32.mrb[5].mxu0 }
 0x670   :  { %v283_v1 = vpop.f32.mrb[6].mxu0 }
 0x671   :  { %532 = vtanh.f32 %v286_v62  ;;  %v494_v2 = vpop.f32.mrb[7].mxu0  ;;  %v451_v4 = vmul.f32 -1.442695, %v286_v62 }
 0x673   :  { %534 = vpow2.f32 %v451_v4 }
 0x67b   :  { %v533_v3 = vpop.eup %532 }
 0x67c   :  { %301 = vrot.lane.b32.xlu0 %v533_v3, %s550_s15 }
 0x67d   :  { %v535_v5 = vpop.eup %534 }
 0x67e   :  { %v290_v6 = vadd.f32 1.0, %v535_v5 }
 0x680   :  { %536 = vrcp.f32 %v290_v6 }
 0x68a   :  { %v537_v7 = vpop.eup %536 }
 0x68b   :  { %v299_v11 = vmul.f32 %v537_v7, %v297_v10 }
 0x6ee   :  { %v302_v8 = vpop.permute.xlu0 %301 }
 0x6ef   :  { %v304_v9 = vmul.f32 %v537_v7, %v302_v8 }
 0x6f1   :  { %306 = vrot.lane.b32.xlu0 %v304_v9, %s551_s16 }
 0x763   :  { %v307_v12 = vpop.permute.xlu0 %306 }
 0x764   :  { %v309_v13 = vadd.f32 %v307_v12, %v299_v11 }
 0x766   :  { %538 = vtanh.f32 %v309_v13 }
 0x770   :  { %v539_v14 = vpop.eup %538 }
 0x771   :  { %312 = vrot.lane.b32.xlu1 %v539_v14, %s550_s15 }
 0x775   :  { %317 = vrot.lane.b32.xlu1 %v309_v13, %s552_s17 }
 0x7e3   :  { %v313_v17 = vpop.permute.xlu1 %312 }
 0x7e4   :  { %v315_v18 = vmul.f32 %v537_v7, %v313_v17 }
 0x7e6   :  { %322 = vrot.lane.b32.xlu0 %v315_v18, %s551_s16 }
 0x7e7   :  { %v318_v19 = vpop.permute.xlu1 %317 }
 0x7e8   :  { %320 = vst.msk [vmem:[#allocation3] sm:$0xff] %vm12_vm0, %v318_v19 }
 0x7ef   :  { %v399_v20 = vld [vmem:[#allocation3] sm:$0xff] }
 0x7f0   :  { %401 = vrot.lane.b32.xlu1 %v399_v20, %s551_s16 }
 0x858   :  { %v323_v21 = vpop.permute.xlu0 %322 }
 0x859   :  { %325 = vst.msk [vmem:[#allocation2] sm:$0xff] %vm12_vm0, %v323_v21  ;;  %452 = vst.msk [vmem:[%s678_s2 + $0x10] sm:$0xff] %vm12_vm0, %v323_v21 }
 0x860   :  { %v330_v0 = vld [vmem:[#allocation2] sm:$0xff] }
 0x861   :  { %v331_v22 = vpack.c.bf16 %v330_v0, %v330_v0 }
 0x862   :  { %v402_v36 = vpop.permute.xlu1 %401 }
 0x863   :  { %500 = vmatmul.mubr.msk.bf16.vlgmr.msra.gmra.mrb[4].mxu1 %vm12_vm0, %v331_v22 }
 0x936   :  { %v385_v24 = vpop.f32.mrb[4].mxu1 }
 0x937   :  { %v391_v25 = vadd.f32 %v453_v23, %v385_v24  ;;  %v501_v26 = vpop.f32.mrb[5].mxu1 }
 0x938   :  { %v388_v27 = vpop.f32.mrb[6].mxu1 }
 0x939   :  { %540 = vtanh.f32 %v391_v25  ;;  %v502_v28 = vpop.f32.mrb[7].mxu1  ;;  %v457_v30 = vmul.f32 -1.442695, %v391_v25 }
 0x93b   :  { %542 = vpow2.f32 %v457_v30 }
 0x943   :  { %v541_v29 = vpop.eup %540 }
 0x944   :  { %406 = vrot.lane.b32.xlu0 %v541_v29, %s550_s15 }
 0x945   :  { %v543_v31 = vpop.eup %542 }
 0x946   :  { %v395_v32 = vadd.f32 1.0, %v543_v31 }
 0x948   :  { %544 = vrcp.f32 %v395_v32 }
 0x952   :  { %v545_v33 = vpop.eup %544 }
 0x953   :  { %v404_v37 = vmul.f32 %v545_v33, %v402_v36 }
 0x9b6   :  { %v407_v34 = vpop.permute.xlu0 %406 }
 0x9b7   :  { %v409_v35 = vmul.f32 %v545_v33, %v407_v34 }
 0x9b9   :  { %411 = vrot.lane.b32.xlu0 %v409_v35, %s551_s16 }
 0xa2b   :  { %v412_v38 = vpop.permute.xlu0 %411 }
 0xa2c   :  { %v414_v39 = vadd.f32 %v412_v38, %v404_v37 }
 0xa2e   :  { %546 = vtanh.f32 %v414_v39  ;;  %422 = vrot.lane.b32.xlu0 %v414_v39, %s552_s17 }
 0xa38   :  { %v547_v40 = vpop.eup %546 }
 0xa39   :  { %417 = vrot.lane.b32.xlu1 %v547_v40, %s550_s15 }
 0xaa0   :  { %v423_v41 = vpop.permute.xlu0 %422 }
 0xaa1   :  { %425 = vst.msk [vmem:[#allocation3] sm:$0xff] %vm12_vm0, %v423_v41 }
 0xaab   :  { %v418_v42 = vpop.permute.xlu1 %417 }
 0xaac   :  { %v420_v43 = vmul.f32 %v545_v33, %v418_v42 }
 0xaae   :  { %427 = vrot.lane.b32.xlu1 %v420_v43, %s551_s16 }
 0xb20   :  { %v428_v44 = vpop.permute.xlu1 %427 }
 0xb21   :  { %430 = vst.msk [vmem:[#allocation2] sm:$0xff] %vm12_vm0, %v428_v44  ;;  %458 = vst.msk [vmem:[%s678_s2 + $0x18] sm:$0xff] %vm12_vm0, %v428_v44 }

// kernel: forward_dense.9
= control target key start
LH: loop header
LB: loop body
LE: loop exit
PB: predicated region body
PF: predicated region fallthrough
CT: control target
= control target key end

     0   :  { %v175_v1 = vmov 0.0   ;;  %vm176_vm0 = vmmov 0   ;;  %s230_s0 = inlined_call_operand.vmem [shape: f32[8,32], index: 0, kind: input, shape index: {}]   ;;  %s231_s1 = inlined_call_operand.vmem [shape: bf16[32,12], index: 1, kind: input, shape index: {}]   ;;  %s232_s2 = inlined_call_operand.vmem [shape: f32[1,12], index: 2, kind: input, shape index: {}]   ;;  %s233_s3 = inlined_call_operand.vmem [shape: f32[1,12], index: 3, kind: input, shape index: {}]   ;;  %s234_s4 = inlined_call_operand.hbm [shape: f32[8,12], index: 4, kind: output, shape index: {}]  }
   0x1   :  { %v147_v0 = vld [vmem:[%s231_s1] sm:$0xff]   ;;  %136 = vmatprep.subr.bf16.mxu0 %v175_v1  ;;  %v148_v2 = vld [vmem:[%s231_s1 + $0x8] sm:$0xff]   ;;  %140 = vmatprep.mubr.msk.bf16.mxu0 %vm176_vm0, %v175_v1 }
   0x2   :  { %137 = vmatpush3.bf16.msra.mxu0 %v147_v0  ;;  %v19_v3 = vld [vmem:[%s230_s0] sm:$0xff] }
   0x3   :  { %9 = vsyncpa [#allocation3], 0  ;;  %138 = vmatprep.subr.bf16.mxu0 %v175_v1  ;;  %v20_v4 = vmax.f32 %v19_v3, 0.0  ;;  %vm46_vm1 = vcmask 261120   ;;  %v127_v7 = vld [vmem:[%s232_s2] ss:$0 sm:$0xff]  ;;  %v98_v15 = vlaneseq }
   0x4   :  { %v132_v21 = vld [vmem:[%s233_s3] ss:$0 sm:$0xff]  ;;  %s177_s2 = smov [#allocation2]   ;;  %vm111_vm4 = vcmask 97280  }
   0x5   :  { %v21_v5 = vmin.f32 %v20_v4, 6.0  ;;  %v99_v19 = vand.u32 127, %v98_v15  ;;  %s119_s23 = sshll.u32 %s177_s2, 4  ;;  %s120_s23 = int_to_ptr.vmem [resolvable:$true] %s119_s23 }
   0x6   :  { %139 = vmatpush3.bf16.msra.mxu0 %v148_v2  ;;  %s151_s24 = scalar_lea.vmem %s120_s23, 128  ;;  %p156_p1 = scmp.lt.s32.totalorder %s120_s23, %s120_s23 }
   0x7   :  { %v22_v6 = vpack.c.bf16 %v21_v5, %v21_v5  ;;  %vm100_vm3 = vcmp.lt.s32.totalorder %v99_v19, 8  ;;  %p152_p0 = scmp.ne.s32.totalorder %s120_s23, %s151_s24  ;;  %p157_p2 = scmp.lt.s32.totalorder %s151_s24, %s151_s24 }
   0x9   :  { %141 = vmatmul.mubr.msk.bf16.vlgmr.msra.gmra.mrb[0].mxu0 %vm46_vm1, %v22_v6  ;;  %p158_p3 = por %p157_p2, %p156_p1 }
   0xb   :  { %p159_p4 = pnand %p158_p3, %p152_p0 }
  0xdc   :  { %v84_v8 = vpop.f32.mrb[0].mxu0 }
  0xdd   :  { %v85_v9 = vadd.f32 %v127_v7, %v84_v8  ;;  %v142_v10 = vpop.f32.mrb[1].mxu0 }
  0xde   :  { %v87_v11 = vpop.f32.mrb[2].mxu0 }
  0xdf   :  { %v91_v12 = vmin.f32 %v85_v9, 0.0  ;;  %v143_v13 = vpop.f32.mrb[3].mxu0  ;;  %vm90_vm2 = vcmp.gt.f32.partialorder %v85_v9, 0.0  ;;  %v109_v24 = vmul.f32 0.001, %v85_v9 }
  0xe1   :  { %v92_v14 = vmul.f32 1.442695, %v91_v12 }
  0xe3   :  { %149 = vpow2.f32 %v92_v14 }
  0xed   :  { %v150_v16 = vpop.eup %149 }
  0xee   :  { %v131_v17 = vadd.f32 -1.0, %v150_v16 }
  0xf0   :  { %v95_v18 = vmul.f32 1.6732632, %v131_v17 }
  0xf2   :  { %v96_v20 = vsel %vm90_vm2, %v85_v9, %v95_v18 }
  0xf3   :  { %v97_v22 = vmul.f32 1.050701, %v96_v20 }
  0xf5   :  { %v108_v23 = vadd.f32 %v132_v21, %v97_v22 }
  0xf7   :  { %v110_v25 = vsel %vm100_vm3, %v108_v23, %v109_v24 }
  0xf8   :  { %112 = vst.msk [vmem:[#allocation2] sm:$0xff] %vm111_vm4, %v110_v25 }
  0xf9   :  { %162 = shalt.err (!%p159_p4)
}
  0xfa   :  { %s163_s3 = scalar_lea.hbm %s234_s4, 128 }
  0xfb   :  { %p164_p5 = scmp.ne.s32.totalorder %s234_s4, %s163_s3  ;;  %p167_p6 = scmp.lt.u32.totalorder %s163_s3, %s234_s4 }
  0xfd   :  { %p169_p7 = pnand %p167_p6, %p164_p5 }
  0xff   :  { %172 = shalt.err (!%p169_p7)
}
 0x100   :  { %122 = dma.vmem_to_hbm [thread:$0]  %s120_s23, 128, %s234_s4, [#allocation3]  }
 0x101   :  { %173 = dma.done.wait [#allocation3], 128  }
 0x102   :  { %174 = vsyncadd [#allocation3], 4294967168 }
 0x103   :  { %126 = vsyncpa [#allocation3], 1 }

</bundles_post_ra>
